<compile_context>
chip_gen: v5e
topology: v5e:2x2
jax: 0.10.0
libtpu: 0.0.40
codegen_flags: <defaults>
</compile_context>

<pallas_src>
from itertools import accumulate

import numpy as np
import jax
import jax.numpy as jnp
from jax import lax
from jax.experimental import pallas as pl
from jax.experimental.pallas import tpu as pltpu

# ----------------------------- configuration --------------------------------
INPUT_DIM = 16
D = 32                      # latent_dim[-1]
OUTPUT_DIM = 2
NUM_PROTOS_PER_CLASS = 3
NUM_PROTOTYPES = OUTPUT_DIM * NUM_PROTOS_PER_CLASS   # 6
PROTO_EPS = 1e-4            # self.epsilon in prototype_distances
BN_EPS = 1e-5
KL_EPS = 1e-7
TOPK_RATIO = 0.5

# ---------------------- packed OUTPUT slab layout ----------------------------
SLAB_W = 128
NODE_NF = 0      # [0, 32)   node_feature (node_embs)
NODE_AF2 = 32    # [32, 34)  abstract_features_2 (last_layer)
NODE_LPOS = 40   # col 40    lambda_pos
GR_EMB = 0       # [0, 32)   graph_emb
GR_SIM = 32      # [32, 38)  prototype_activations
GR_DIST = 40     # [40, 46)  min_distance
GR_LOGIT = 48    # [48, 50)  logits
GR_PROB = 56     # [56, 58)  probs
GR_KL = 64       # col 64    KL_Loss (broadcast)
GR_PEN = 72      # col 72    pos_penalty (broadcast)

# ---------------------- packed node-INPUT slab layout ------------------------
NI_X = 0         # [0, 16)   x
NI_GUM = 16      # [16, 18)  gumbel noise
NI_UNI = 32      # [32, 64)  uniform noise
NODE_IN_W = 64

# ---------------------- packed CONSTANT slab layout (rows) -------------------
# All block starts are multiples of 8 (sublane-aligned).  Params occupy
# lanes [0, 32); placement matrices occupy the full 128 lanes.
C_W1_0 = 0       # (16, 32)
C_W2_0 = 16      # (32, 32)
C_W1_1 = 48      # (32, 32)
C_W2_1 = 80      # (32, 32)
C_FC1_W = 112    # (32, 32)
C_FC2_W = 144    # (32, 32)  cols 0:2 = fc2_w, rest 0
C_WLG_T = 176    # (32, 32)  cols 0:2 = wl_g^T
C_PROTO = 208    # (6, 32)
C_WLP_T = 216    # (6, 32)   cols 0:2 = wl_p^T
C_VEC = 224      # (8, 32)   row vectors (see V_* below)
V_BN_G0, V_BN_B0, V_BN_G1, V_BN_B1, V_FC1_B, V_FC2_B, V_P2 = 0, 1, 2, 3, 4, 5, 6
C_PM32 = 232     # (32, 128) placement: 32 cols -> slab cols 0:32 (nf & graph_emb)
C_PM_A2 = 264    # (2, 128)  -> cols 32:34
C_PM_LPOS = 272  # (1, 128)  -> col 40
C_PM_SIM = 280   # (6, 128)  -> cols 32:38
C_PM_DIST = 288  # (6, 128)  -> cols 40:46
C_PM_LOGIT = 296  # (2, 128) -> cols 48:50
C_PM_PROB = 304  # (2, 128)  -> cols 56:58
C_PM_KL = 312    # (1, 128)  -> col 64
C_PM_PEN = 320   # (1, 128)  -> col 72
CONST_ROWS = 328


def _vmem():
    return pl.BlockSpec(memory_space=pltpu.MemorySpace.VMEM)


def _compiler_params():
    # Per-generation VMEM ceiling (leave 1/8 headroom); fall back to default.
    vmem_limit = None
    try:
        cap = getattr(pltpu.get_tpu_info(), "vmem_capacity_bytes", None)
        if cap:
            vmem_limit = int(cap) * 7 // 8
    except Exception:
        vmem_limit = None
    return pltpu.CompilerParams(vmem_limit_bytes=vmem_limit)


# ----------------------- in-kernel helper functions ---------------------------
def _rows(ref, row, nrows, width):
    """Static (nrows, width) window of a slab ref starting at `row`, lane 0."""
    return ref[pl.ds(row, nrows), pl.ds(0, width)]


def _softmax_rows(z):
    z = z - jnp.max(z, axis=1, keepdims=True)
    e = jnp.exp(z)
    return e / jnp.sum(e, axis=1, keepdims=True)   # exact (no approx reciprocal)


# ------------------------------ fused kernel ----------------------------------
def fused_forward_kernel(node_in_ref, adj_ref, pool_ref, const_ref,
                         node_out_ref, graph_out_ref):
    f32 = jnp.float32
    P = NUM_PROTOTYPES

    # ---- unpack per-node inputs ------------------------------------------------
    nin = node_in_ref[...]                                    # (N, 64)
    x = nin[:, NI_X:NI_X + INPUT_DIM]                         # (N, 16)
    gnoise = nin[:, NI_GUM:NI_GUM + 2]                        # (N, 2)
    unoise = nin[:, NI_UNI:NI_UNI + D]                        # (N, 32)

    # bf16 on the wire (exact 0/1), f32 for all math
    adj = adj_ref[...].astype(f32)                            # (N, N), adj[dst, src] = 1

    vecs = _rows(const_ref, C_VEC, 8, D)                      # (8, 32)
    bn_g0, bn_b0 = vecs[V_BN_G0:V_BN_G0 + 1, :], vecs[V_BN_B0:V_BN_B0 + 1, :]
    bn_g1, bn_b1 = vecs[V_BN_G1:V_BN_G1 + 1, :], vecs[V_BN_B1:V_BN_B1 + 1, :]
    fc1_b = vecs[V_FC1_B:V_FC1_B + 1, :]
    fc2_b = vecs[V_FC2_B:V_FC2_B + 1, :]
    p2 = vecs[V_P2:V_P2 + 1, 0:P]                             # (1, P) precomputed |proto|^2

    # ---- GINConv (train_eps=False): (1+0)*x + A@x -> Lin -> ReLU -> Lin -> ReLU -> BN
    def gin_layer(h, w1, w2, gamma, beta, outer_relu):
        agg = h + jnp.dot(adj, h, preferred_element_type=f32)
        h1 = jnp.maximum(jnp.dot(agg, w1, preferred_element_type=f32), 0.0)
        h2 = jnp.maximum(jnp.dot(h1, w2, preferred_element_type=f32), 0.0)
        mu = jnp.mean(h2, axis=0, keepdims=True)
        var = jnp.mean((h2 - mu) ** 2, axis=0, keepdims=True)  # batch stats (training)
        out = (h2 - mu) * lax.rsqrt(var + BN_EPS) * gamma + beta
        return jnp.maximum(out, 0.0) if outer_relu else out

    nf1 = gin_layer(x, _rows(const_ref, C_W1_0, INPUT_DIM, D),
                    _rows(const_ref, C_W2_0, D, D), bn_g0, bn_b0, True)
    nf = gin_layer(nf1, _rows(const_ref, C_W1_1, D, D),
                   _rows(const_ref, C_W2_1, D, D), bn_g1, bn_b1, False)

    # ---- head: fc1 + tanh, fc2, softmax, gumbel-softmax (noise supplied) --------
    a1 = jnp.tanh(jnp.dot(nf, _rows(const_ref, C_FC1_W, D, D),
                          preferred_element_type=f32) + fc1_b)          # (N, D)
    a2_pad = jnp.dot(a1, _rows(const_ref, C_FC2_W, D, D),
                     preferred_element_type=f32) + fc2_b                # (N, 32), cols>=2 are 0
    a2 = a2_pad[:, 0:2]                                                 # abstract_features_2
    assign = _softmax_rows(a2)                                          # (N, 2)
    gum = _softmax_rows(assign + gnoise)                                # gumbel_softmax(assign, tau=1)
    lam_pos = gum[:, 0:1]                                               # (N, 1)
    lam_neg = 1.0 - lam_pos

    # ---- information bottleneck: noisy features, mean readout, KL ---------------
    n_nodes = nf.shape[0]
    mu = jnp.mean(nf, axis=0, keepdims=True)                            # (1, D)
    centered = nf - mu
    std = jnp.sqrt(jnp.sum(centered * centered, axis=0, keepdims=True) / (n_nodes - 1))
    noisy_mean = lam_pos * nf + lam_neg * mu
    noisy_std = lam_neg * std
    noisy = noisy_mean + unoise * noisy_std
    g_emb = jnp.dot(pool_ref[...], noisy, preferred_element_type=f32)   # pre-scaled mean pool (G, D)
    denom = std + KL_EPS
    kl_t = 0.5 * (noisy_std * noisy_std) / (denom * denom) \
        + jnp.sum((lam_pos * centered / denom) ** 2, axis=0, keepdims=True)
    kl11 = jnp.mean(jnp.mean(kl_t, axis=1, keepdims=True), axis=0, keepdims=True)  # (1, 1)

    # ---- connectivity penalty --------------------------------------------------
    # M = assign^T @ adj_mp @ assign; reference new_adj = M^T; diag of its
    # row-L1-normalization == diag(M) / colsum(|M|)  -> no second adjacency, no transpose.
    tmp = jnp.dot(adj, assign, preferred_element_type=f32)              # (N, 2)
    m22 = lax.dot_general(assign, tmp, (((0,), (0,)), ((), ())),
                          preferred_element_type=f32)                   # (2, 2)
    colsum = jnp.maximum(jnp.sum(jnp.abs(m22), axis=0, keepdims=True), 1e-12)
    eye = (lax.broadcasted_iota(jnp.int32, (2, 2), 0)
           == lax.broadcasted_iota(jnp.int32, (2, 2), 1))
    diag = jnp.sum(jnp.where(eye, m22, 0.0), axis=0, keepdims=True)     # (1, 2)
    pen11 = jnp.sum((diag / colsum - 1.0) ** 2, axis=1, keepdims=True) * 0.5  # MSE over 2

    # ---- prototype distances + last layer + softmax -----------------------------
    proto = _rows(const_ref, C_PROTO, P, D)                             # (P, D)
    xp = lax.dot_general(g_emb, proto, (((1,), (1,)), ((), ())),
                         preferred_element_type=f32)                    # (G, P)
    g2 = jnp.sum(g_emb * g_emb, axis=1, keepdims=True)                  # (G, 1)
    dist = jnp.maximum(-2.0 * xp + g2 + p2, 0.0)                        # clamp f32 cancellation
    sim = jnp.log((dist + 1.0) / (dist + PROTO_EPS))
    logits_pad = jnp.dot(sim, _rows(const_ref, C_WLP_T, P, D), preferred_element_type=f32) \
        + jnp.dot(g_emb, _rows(const_ref, C_WLG_T, D, D), preferred_element_type=f32)
    logits = logits_pad[:, 0:OUTPUT_DIM]                                # (G, 2)
    probs = _softmax_rows(logits)

    # ---- pack outputs into lane-dense slabs (host-precomputed placement mats) ----
    pm32 = _rows(const_ref, C_PM32, D, SLAB_W)
    node_out_ref[...] = (
        jnp.dot(nf, pm32, preferred_element_type=f32)
        + jnp.dot(a2, _rows(const_ref, C_PM_A2, 2, SLAB_W), preferred_element_type=f32)
        + lam_pos * _rows(const_ref, C_PM_LPOS, 1, SLAB_W))
    graph_out_ref[...] = (
        jnp.dot(g_emb, pm32, preferred_element_type=f32)
        + jnp.dot(sim, _rows(const_ref, C_PM_SIM, P, SLAB_W), preferred_element_type=f32)
        + jnp.dot(dist, _rows(const_ref, C_PM_DIST, P, SLAB_W), preferred_element_type=f32)
        + jnp.dot(logits, _rows(const_ref, C_PM_LOGIT, OUTPUT_DIM, SLAB_W),
                  preferred_element_type=f32)
        + jnp.dot(probs, _rows(const_ref, C_PM_PROB, OUTPUT_DIM, SLAB_W),
                  preferred_element_type=f32)
        + kl11 * _rows(const_ref, C_PM_KL, 1, SLAB_W)
        + pen11 * _rows(const_ref, C_PM_PEN, 1, SLAB_W))


# ------------------------------ forward wrapper -------------------------------
def forward(const_slab, node_in, adj_bf16, pool_mat):
    N = node_in.shape[0]
    G = pool_mat.shape[0]
    P = NUM_PROTOTYPES

    node_slab, graph_slab = pl.pallas_call(
        fused_forward_kernel,
        out_shape=(jax.ShapeDtypeStruct((N, SLAB_W), jnp.float32),
                   jax.ShapeDtypeStruct((G, SLAB_W), jnp.float32)),
        in_specs=[_vmem()] * 4,
        out_specs=(_vmem(), _vmem()),
        compiler_params=_compiler_params(),
    )(node_in, adj_bf16, pool_mat, const_slab)

    return dict(
        node_embs=node_slab[:, NODE_NF:NODE_NF + D],
        last_layer=node_slab[:, NODE_AF2:NODE_AF2 + OUTPUT_DIM],
        lambda_pos=node_slab[:, NODE_LPOS:NODE_LPOS + 1],
        graph_emb=graph_slab[:, GR_EMB:GR_EMB + D],
        prototype_activations=graph_slab[:, GR_SIM:GR_SIM + P],
        min_distance=graph_slab[:, GR_DIST:GR_DIST + P],
        logits=graph_slab[:, GR_LOGIT:GR_LOGIT + OUTPUT_DIM],
        probs=graph_slab[:, GR_PROB:GR_PROB + OUTPUT_DIM],
        KL_Loss=graph_slab[0, GR_KL],
        pos_penalty=graph_slab[0, GR_PEN],
    )


# ------------------------------ parameter init --------------------------------
def init_params(key):
    ks = jax.random.split(key, 12)

    def lin(k, fan_in, shape):
        b = 1.0 / np.sqrt(fan_in)
        return jax.random.uniform(k, shape, jnp.float32, -b, b)

    params = {
        "w1_0": lin(ks[0], INPUT_DIM, (INPUT_DIM, D)),
        "w2_0": lin(ks[1], D, (D, D)),
        "bn_g_0": jnp.ones((1, D), jnp.float32),
        "bn_b_0": jnp.zeros((1, D), jnp.float32),
        "w1_1": lin(ks[2], D, (D, D)),
        "w2_1": lin(ks[3], D, (D, D)),
        "bn_g_1": jnp.ones((1, D), jnp.float32),
        "bn_b_1": jnp.zeros((1, D), jnp.float32),
        "fc1_w": lin(ks[4], D, (D, D)),
        "fc1_b": lin(ks[5], D, (1, D)),
        "fc2_w": lin(ks[6], D, (D, 2)),
        "fc2_b": lin(ks[7], D, (1, 2)),
        "prototype_vectors": jax.random.uniform(ks[8], (NUM_PROTOTYPES, D), jnp.float32),
    }
    # last_layer: Linear(D + P, output_dim, bias=False); first P columns set by
    # set_last_layer_incorrect_connection(-0.5).
    wl_p = np.full((OUTPUT_DIM, NUM_PROTOTYPES), -0.5, np.float32)
    for j in range(NUM_PROTOTYPES):
        wl_p[j // NUM_PROTOS_PER_CLASS, j] = 1.0
    params["wl_p"] = jnp.asarray(wl_p)
    params["wl_g"] = lin(ks[9], NUM_PROTOTYPES + D, (OUTPUT_DIM, D))
    return params


# ------------------------- host-side constant packing -------------------------
def _placement(width, col_start):
    m = np.zeros((width, SLAB_W), np.float32)
    m[np.arange(width), col_start + np.arange(width)] = 1.0
    return m


def pack_constants(params):
    s = np.zeros((CONST_ROWS, SLAB_W), np.float32)

    def put(row, arr, col=0):
        a = np.asarray(arr, np.float32)
        s[row:row + a.shape[0], col:col + a.shape[1]] = a

    put(C_W1_0, params["w1_0"])
    put(C_W2_0, params["w2_0"])
    put(C_W1_1, params["w1_1"])
    put(C_W2_1, params["w2_1"])
    put(C_FC1_W, params["fc1_w"])
    put(C_FC2_W, params["fc2_w"])                              # (32, 2) -> cols 0:2
    put(C_WLG_T, np.asarray(params["wl_g"], np.float32).T)     # (32, 2)
    put(C_PROTO, params["prototype_vectors"])
    put(C_WLP_T, np.asarray(params["wl_p"], np.float32).T)     # (6, 2)
    put(C_VEC + V_BN_G0, params["bn_g_0"])
    put(C_VEC + V_BN_B0, params["bn_b_0"])
    put(C_VEC + V_BN_G1, params["bn_g_1"])
    put(C_VEC + V_BN_B1, params["bn_b_1"])
    put(C_VEC + V_FC1_B, params["fc1_b"])
    put(C_VEC + V_FC2_B, params["fc2_b"])
    proto = np.asarray(params["prototype_vectors"], np.float32)
    s[C_VEC + V_P2, 0:NUM_PROTOTYPES] = (proto * proto).sum(axis=1)
    # output placement matrices (hoisted out of the kernel)
    put(C_PM32, _placement(D, NODE_NF))            # shared by node_feature and graph_emb
    put(C_PM_A2, _placement(2, NODE_AF2))
    put(C_PM_LPOS, _placement(1, NODE_LPOS))
    put(C_PM_SIM, _placement(NUM_PROTOTYPES, GR_SIM))
    put(C_PM_DIST, _placement(NUM_PROTOTYPES, GR_DIST))
    put(C_PM_LOGIT, _placement(OUTPUT_DIM, GR_LOGIT))
    put(C_PM_PROB, _placement(OUTPUT_DIM, GR_PROB))
    put(C_PM_KL, _placement(1, GR_KL))
    put(C_PM_PEN, _placement(1, GR_PEN))
    return jnp.asarray(s)


# --------------------------------- main ---------------------------------------
if __name__ == "__main__":
    key = jax.random.PRNGKey(0)
    kp, kx, kg, ku = jax.random.split(key, 4)

    # small synthetic batch of 2 graphs: 9 + 7 = 16 nodes, ring edges per graph
    sizes = [9, 7]
    N = sum(sizes)
    G = len(sizes)
    batch = np.concatenate([np.full(sz, i, np.int64) for i, sz in enumerate(sizes)])

    src_list, dst_list = [], []
    start = 0
    for sz in sizes:
        for i in range(sz):
            a = start + i
            b = start + (i + 1) % sz
            src_list += [a, b]
            dst_list += [b, a]
        start += sz
    edge_index = np.stack([np.array(src_list), np.array(dst_list)])      # (2, E)

    adj_mp = np.zeros((N, N), np.float32)        # message passing: agg_i = sum_{j->i} x_j
    adj_mp[edge_index[1], edge_index[0]] = 1.0

    pool = np.zeros((G, N), np.float32)          # pre-scaled mean pool (inv_counts folded in)
    for i, sz in enumerate(sizes):
        pool[i, batch == i] = 1.0 / sz

    x = jax.random.normal(kx, (N, INPUT_DIM), jnp.float32)
    gumbel_noise = jax.random.gumbel(kg, (N, 2), jnp.float32)            # for gumbel_softmax
    uniform_noise = jax.random.uniform(ku, (N, D), jnp.float32)          # torch.rand_like

    node_in = jnp.zeros((N, NODE_IN_W), jnp.float32)
    node_in = node_in.at[:, NI_X:NI_X + INPUT_DIM].set(x)
    node_in = node_in.at[:, NI_GUM:NI_GUM + 2].set(gumbel_noise)
    node_in = node_in.at[:, NI_UNI:NI_UNI + D].set(uniform_noise)

    params = init_params(kp)
    const_slab = pack_constants(params)

    outs = forward(const_slab, node_in,
                   jnp.asarray(adj_mp, jnp.bfloat16), jnp.asarray(pool))
    outs = jax.block_until_ready(outs)

    # Host-side ragged bookkeeping (python lists in the reference implementation).
    lam_pos = np.asarray(outs["lambda_pos"])[:, 0]
    active = lam_pos > 0.5
    node_number = list(accumulate([0] + [int((batch == i).sum()) for i in range(G)]))
    active_node_index, topk_node_index, bottomk_node_index = [], [], []
    for j in range(len(node_number) - 1):
        s0, e0 = node_number[j], node_number[j + 1]
        active_node_index.append(np.nonzero(active[s0:e0])[0].tolist())
        scores = lam_pos[s0:e0]
        k = max(1, int((e0 - s0) * TOPK_RATIO))
        topk_node_index.append(np.argsort(-scores, kind="stable")[:k].tolist())
        bottomk_node_index.append(np.argsort(scores, kind="stable")[:k].tolist())

    mlp_embeddings_list = {"node_embs": outs["node_embs"],
                           "last_layer": outs["last_layer"]}
    # cont=True return tuple (matching the reference):
    result = (outs["logits"], outs["probs"], active_node_index, outs["graph_emb"],
              outs["KL_Loss"], outs["pos_penalty"], outs["prototype_activations"],
              outs["min_distance"], topk_node_index, bottomk_node_index,
              mlp_embeddings_list)

    assert result[0].shape == (G, OUTPUT_DIM)
    assert result[3].shape == (G, D)
    assert np.all(np.isfinite(np.asarray(result[0])))
    assert np.all(np.isfinite(np.asarray(result[1])))
    assert np.isfinite(float(result[4])) and np.isfinite(float(result[5]))
    print("KERNEL_OK")
</pallas_src>

<mosaic_0001>
module attributes {stable_mosaic.version = 11 : i64} {
  func.func @fused_forward_kernel(%arg0: memref<16x64xf32, #tpu.memory_space<vmem>>, %arg1: memref<16x16xbf16, #tpu.memory_space<vmem>>, %arg2: memref<2x16xf32, #tpu.memory_space<vmem>>, %arg3: memref<328x128xf32, #tpu.memory_space<vmem>>, %arg4: memref<16x128xf32, #tpu.memory_space<vmem>>, %arg5: memref<2x128xf32, #tpu.memory_space<vmem>>) attributes {dimension_semantics = [], scalar_prefetch = 0 : i64, scratch_operands = 0 : i64, tpu.core_type = #tpu.core_type<tc>} {
    %c0 = arith.constant 0 : index
    %c0_0 = arith.constant 0 : index
    %0 = vector.load %arg0[%c0, %c0_0] : memref<16x64xf32, #tpu.memory_space<vmem>>, vector<16x64xf32>
    %1 = vector.extract_strided_slice %0 {offsets = [0, 0], sizes = [16, 16], strides = [1, 1]} : vector<16x64xf32> to vector<16x16xf32>
    %2 = vector.extract_strided_slice %0 {offsets = [0, 16], sizes = [16, 2], strides = [1, 1]} : vector<16x64xf32> to vector<16x2xf32>
    %3 = vector.extract_strided_slice %0 {offsets = [0, 32], sizes = [16, 32], strides = [1, 1]} : vector<16x64xf32> to vector<16x32xf32>
    %c0_1 = arith.constant 0 : index
    %c0_2 = arith.constant 0 : index
    %4 = vector.load %arg1[%c0_1, %c0_2] : memref<16x16xbf16, #tpu.memory_space<vmem>>, vector<16x16xbf16>
    %5 = arith.extf %4 : vector<16x16xbf16> to vector<16x16xf32>
    %c224 = arith.constant 224 : index
    %c0_3 = arith.constant 0 : index
    %6 = vector.load %arg3[%c224, %c0_3] : memref<328x128xf32, #tpu.memory_space<vmem>>, vector<8x32xf32>
    %7 = vector.extract_strided_slice %6 {offsets = [0, 0], sizes = [1, 32], strides = [1, 1]} : vector<8x32xf32> to vector<1x32xf32>
    %8 = vector.extract_strided_slice %6 {offsets = [1, 0], sizes = [1, 32], strides = [1, 1]} : vector<8x32xf32> to vector<1x32xf32>
    %9 = vector.extract_strided_slice %6 {offsets = [2, 0], sizes = [1, 32], strides = [1, 1]} : vector<8x32xf32> to vector<1x32xf32>
    %10 = vector.extract_strided_slice %6 {offsets = [3, 0], sizes = [1, 32], strides = [1, 1]} : vector<8x32xf32> to vector<1x32xf32>
    %11 = vector.extract_strided_slice %6 {offsets = [4, 0], sizes = [1, 32], strides = [1, 1]} : vector<8x32xf32> to vector<1x32xf32>
    %12 = vector.extract_strided_slice %6 {offsets = [5, 0], sizes = [1, 32], strides = [1, 1]} : vector<8x32xf32> to vector<1x32xf32>
    %13 = vector.extract_strided_slice %6 {offsets = [6, 0], sizes = [1, 6], strides = [1, 1]} : vector<8x32xf32> to vector<1x6xf32>
    %c0_4 = arith.constant 0 : index
    %c0_5 = arith.constant 0 : index
    %14 = vector.load %arg3[%c0_4, %c0_5] : memref<328x128xf32, #tpu.memory_space<vmem>>, vector<16x32xf32>
    %c16 = arith.constant 16 : index
    %c0_6 = arith.constant 0 : index
    %15 = vector.load %arg3[%c16, %c0_6] : memref<328x128xf32, #tpu.memory_space<vmem>>, vector<32x32xf32>
    %cst = arith.constant dense<0.000000e+00> : vector<16x16xf32>
    %16 = tpu.matmul %5, %1, %cst {dimension_numbers = #tpu.dot_dimension_numbers<[1], [0], [0], [1], [0, 0, 1, 1], [], []>} : vector<16x16xf32>, vector<16x16xf32>, vector<16x16xf32> -> vector<16x16xf32>
    %17 = arith.addf %1, %16 : vector<16x16xf32>
    %cst_7 = arith.constant dense<0.000000e+00> : vector<16x32xf32>
    %18 = tpu.matmul %17, %14, %cst_7 {dimension_numbers = #tpu.dot_dimension_numbers<[1], [0], [0], [1], [0, 0, 1, 1], [], []>} : vector<16x16xf32>, vector<16x32xf32>, vector<16x32xf32> -> vector<16x32xf32>
    %cst_8 = arith.constant 0.000000e+00 : f32
    %19 = vector.broadcast %cst_8 : f32 to vector<16x32xf32>
    %20 = arith.maximumf %18, %19 : vector<16x32xf32>
    %cst_9 = arith.constant dense<0.000000e+00> : vector<16x32xf32>
    %21 = tpu.matmul %20, %15, %cst_9 {dimension_numbers = #tpu.dot_dimension_numbers<[1], [0], [0], [1], [0, 0, 1, 1], [], []>} : vector<16x32xf32>, vector<32x32xf32>, vector<16x32xf32> -> vector<16x32xf32>
    %cst_10 = arith.constant 0.000000e+00 : f32
    %22 = vector.broadcast %cst_10 : f32 to vector<16x32xf32>
    %23 = arith.maximumf %21, %22 : vector<16x32xf32>
    %cst_11 = arith.constant dense<0.000000e+00> : vector<32xf32>
    %24 = vector.multi_reduction <add>, %23, %cst_11 [0] : vector<16x32xf32> to vector<32xf32>
    %25 = vector.shape_cast %24 : vector<32xf32> to vector<1x32xf32>
    %cst_12 = arith.constant 1.600000e+01 : f32
    %26 = vector.broadcast %cst_12 : f32 to vector<1x32xf32>
    %27 = arith.divf %25, %26 : vector<1x32xf32>
    %28 = vector.broadcast %27 : vector<1x32xf32> to vector<16x32xf32>
    %29 = arith.subf %23, %28 : vector<16x32xf32>
    %30 = arith.mulf %29, %29 : vector<16x32xf32>
    %cst_13 = arith.constant dense<0.000000e+00> : vector<32xf32>
    %31 = vector.multi_reduction <add>, %30, %cst_13 [0] : vector<16x32xf32> to vector<32xf32>
    %32 = vector.shape_cast %31 : vector<32xf32> to vector<1x32xf32>
    %cst_14 = arith.constant 1.600000e+01 : f32
    %33 = vector.broadcast %cst_14 : f32 to vector<1x32xf32>
    %34 = arith.divf %32, %33 : vector<1x32xf32>
    %35 = vector.broadcast %27 : vector<1x32xf32> to vector<16x32xf32>
    %36 = arith.subf %23, %35 : vector<16x32xf32>
    %cst_15 = arith.constant 9.99999974E-6 : f32
    %37 = vector.broadcast %cst_15 : f32 to vector<1x32xf32>
    %38 = arith.addf %34, %37 : vector<1x32xf32>
    %39 = math.rsqrt %38 : vector<1x32xf32>
    %40 = vector.broadcast %39 : vector<1x32xf32> to vector<16x32xf32>
    %41 = arith.mulf %36, %40 : vector<16x32xf32>
    %42 = vector.broadcast %7 : vector<1x32xf32> to vector<16x32xf32>
    %43 = arith.mulf %41, %42 : vector<16x32xf32>
    %44 = vector.broadcast %8 : vector<1x32xf32> to vector<16x32xf32>
    %45 = arith.addf %43, %44 : vector<16x32xf32>
    %cst_16 = arith.constant 0.000000e+00 : f32
    %46 = vector.broadcast %cst_16 : f32 to vector<16x32xf32>
    %47 = arith.maximumf %45, %46 : vector<16x32xf32>
    %c48 = arith.constant 48 : index
    %c0_17 = arith.constant 0 : index
    %48 = vector.load %arg3[%c48, %c0_17] : memref<328x128xf32, #tpu.memory_space<vmem>>, vector<32x32xf32>
    %c80 = arith.constant 80 : index
    %c0_18 = arith.constant 0 : index
    %49 = vector.load %arg3[%c80, %c0_18] : memref<328x128xf32, #tpu.memory_space<vmem>>, vector<32x32xf32>
    %cst_19 = arith.constant dense<0.000000e+00> : vector<16x32xf32>
    %50 = tpu.matmul %5, %47, %cst_19 {dimension_numbers = #tpu.dot_dimension_numbers<[1], [0], [0], [1], [0, 0, 1, 1], [], []>} : vector<16x16xf32>, vector<16x32xf32>, vector<16x32xf32> -> vector<16x32xf32>
    %51 = arith.addf %47, %50 : vector<16x32xf32>
    %cst_20 = arith.constant dense<0.000000e+00> : vector<16x32xf32>
    %52 = tpu.matmul %51, %48, %cst_20 {dimension_numbers = #tpu.dot_dimension_numbers<[1], [0], [0], [1], [0, 0, 1, 1], [], []>} : vector<16x32xf32>, vector<32x32xf32>, vector<16x32xf32> -> vector<16x32xf32>
    %cst_21 = arith.constant 0.000000e+00 : f32
    %53 = vector.broadcast %cst_21 : f32 to vector<16x32xf32>
    %54 = arith.maximumf %52, %53 : vector<16x32xf32>
    %cst_22 = arith.constant dense<0.000000e+00> : vector<16x32xf32>
    %55 = tpu.matmul %54, %49, %cst_22 {dimension_numbers = #tpu.dot_dimension_numbers<[1], [0], [0], [1], [0, 0, 1, 1], [], []>} : vector<16x32xf32>, vector<32x32xf32>, vector<16x32xf32> -> vector<16x32xf32>
    %cst_23 = arith.constant 0.000000e+00 : f32
    %56 = vector.broadcast %cst_23 : f32 to vector<16x32xf32>
    %57 = arith.maximumf %55, %56 : vector<16x32xf32>
    %cst_24 = arith.constant dense<0.000000e+00> : vector<32xf32>
    %58 = vector.multi_reduction <add>, %57, %cst_24 [0] : vector<16x32xf32> to vector<32xf32>
    %59 = vector.shape_cast %58 : vector<32xf32> to vector<1x32xf32>
    %cst_25 = arith.constant 1.600000e+01 : f32
    %60 = vector.broadcast %cst_25 : f32 to vector<1x32xf32>
    %61 = arith.divf %59, %60 : vector<1x32xf32>
    %62 = vector.broadcast %61 : vector<1x32xf32> to vector<16x32xf32>
    %63 = arith.subf %57, %62 : vector<16x32xf32>
    %64 = arith.mulf %63, %63 : vector<16x32xf32>
    %cst_26 = arith.constant dense<0.000000e+00> : vector<32xf32>
    %65 = vector.multi_reduction <add>, %64, %cst_26 [0] : vector<16x32xf32> to vector<32xf32>
    %66 = vector.shape_cast %65 : vector<32xf32> to vector<1x32xf32>
    %cst_27 = arith.constant 1.600000e+01 : f32
    %67 = vector.broadcast %cst_27 : f32 to vector<1x32xf32>
    %68 = arith.divf %66, %67 : vector<1x32xf32>
    %69 = vector.broadcast %61 : vector<1x32xf32> to vector<16x32xf32>
    %70 = arith.subf %57, %69 : vector<16x32xf32>
    %cst_28 = arith.constant 9.99999974E-6 : f32
    %71 = vector.broadcast %cst_28 : f32 to vector<1x32xf32>
    %72 = arith.addf %68, %71 : vector<1x32xf32>
    %73 = math.rsqrt %72 : vector<1x32xf32>
    %74 = vector.broadcast %73 : vector<1x32xf32> to vector<16x32xf32>
    %75 = arith.mulf %70, %74 : vector<16x32xf32>
    %76 = vector.broadcast %9 : vector<1x32xf32> to vector<16x32xf32>
    %77 = arith.mulf %75, %76 : vector<16x32xf32>
    %78 = vector.broadcast %10 : vector<1x32xf32> to vector<16x32xf32>
    %79 = arith.addf %77, %78 : vector<16x32xf32>
    %c112 = arith.constant 112 : index
    %c0_29 = arith.constant 0 : index
    %80 = vector.load %arg3[%c112, %c0_29] : memref<328x128xf32, #tpu.memory_space<vmem>>, vector<32x32xf32>
    %cst_30 = arith.constant dense<0.000000e+00> : vector<16x32xf32>
    %81 = tpu.matmul %79, %80, %cst_30 {dimension_numbers = #tpu.dot_dimension_numbers<[1], [0], [0], [1], [0, 0, 1, 1], [], []>} : vector<16x32xf32>, vector<32x32xf32>, vector<16x32xf32> -> vector<16x32xf32>
    %82 = vector.broadcast %11 : vector<1x32xf32> to vector<16x32xf32>
    %83 = arith.addf %81, %82 : vector<16x32xf32>
    %84 = math.tanh %83 : vector<16x32xf32>
    %c144 = arith.constant 144 : index
    %c0_31 = arith.constant 0 : index
    %85 = vector.load %arg3[%c144, %c0_31] : memref<328x128xf32, #tpu.memory_space<vmem>>, vector<32x32xf32>
    %cst_32 = arith.constant dense<0.000000e+00> : vector<16x32xf32>
    %86 = tpu.matmul %84, %85, %cst_32 {dimension_numbers = #tpu.dot_dimension_numbers<[1], [0], [0], [1], [0, 0, 1, 1], [], []>} : vector<16x32xf32>, vector<32x32xf32>, vector<16x32xf32> -> vector<16x32xf32>
    %87 = vector.broadcast %12 : vector<1x32xf32> to vector<16x32xf32>
    %88 = arith.addf %86, %87 : vector<16x32xf32>
    %89 = vector.extract_strided_slice %88 {offsets = [0, 0], sizes = [16, 2], strides = [1, 1]} : vector<16x32xf32> to vector<16x2xf32>
    %cst_33 = arith.constant dense<0xFF800000> : vector<16xf32>
    %90 = vector.multi_reduction <maximumf>, %89, %cst_33 [1] : vector<16x2xf32> to vector<16xf32>
    %91 = vector.shape_cast %90 : vector<16xf32> to vector<16x1xf32>
    %92 = vector.broadcast %91 : vector<16x1xf32> to vector<16x2xf32>
    %93 = arith.subf %89, %92 : vector<16x2xf32>
    %94 = math.exp %93 : vector<16x2xf32>
    %cst_34 = arith.constant dense<0.000000e+00> : vector<16xf32>
    %95 = vector.multi_reduction <add>, %94, %cst_34 [1] : vector<16x2xf32> to vector<16xf32>
    %96 = vector.shape_cast %95 : vector<16xf32> to vector<16x1xf32>
    %97 = vector.broadcast %96 : vector<16x1xf32> to vector<16x2xf32>
    %98 = arith.divf %94, %97 : vector<16x2xf32>
    %99 = arith.addf %98, %2 : vector<16x2xf32>
    %cst_35 = arith.constant dense<0xFF800000> : vector<16xf32>
    %100 = vector.multi_reduction <maximumf>, %99, %cst_35 [1] : vector<16x2xf32> to vector<16xf32>
    %101 = vector.shape_cast %100 : vector<16xf32> to vector<16x1xf32>
    %102 = vector.broadcast %101 : vector<16x1xf32> to vector<16x2xf32>
    %103 = arith.subf %99, %102 : vector<16x2xf32>
    %104 = math.exp %103 : vector<16x2xf32>
    %cst_36 = arith.constant dense<0.000000e+00> : vector<16xf32>
    %105 = vector.multi_reduction <add>, %104, %cst_36 [1] : vector<16x2xf32> to vector<16xf32>
    %106 = vector.shape_cast %105 : vector<16xf32> to vector<16x1xf32>
    %107 = vector.broadcast %106 : vector<16x1xf32> to vector<16x2xf32>
    %108 = arith.divf %104, %107 : vector<16x2xf32>
    %109 = vector.extract_strided_slice %108 {offsets = [0, 0], sizes = [16, 1], strides = [1, 1]} : vector<16x2xf32> to vector<16x1xf32>
    %cst_37 = arith.constant 1.000000e+00 : f32
    %110 = vector.broadcast %cst_37 : f32 to vector<16x1xf32>
    %111 = arith.subf %110, %109 : vector<16x1xf32>
    %cst_38 = arith.constant dense<0.000000e+00> : vector<32xf32>
    %112 = vector.multi_reduction <add>, %79, %cst_38 [0] : vector<16x32xf32> to vector<32xf32>
    %113 = vector.shape_cast %112 : vector<32xf32> to vector<1x32xf32>
    %cst_39 = arith.constant 1.600000e+01 : f32
    %114 = vector.broadcast %cst_39 : f32 to vector<1x32xf32>
    %115 = arith.divf %113, %114 : vector<1x32xf32>
    %116 = vector.broadcast %115 : vector<1x32xf32> to vector<16x32xf32>
    %117 = arith.subf %79, %116 : vector<16x32xf32>
    %118 = arith.mulf %117, %117 : vector<16x32xf32>
    %cst_40 = arith.constant dense<0.000000e+00> : vector<32xf32>
    %119 = vector.multi_reduction <add>, %118, %cst_40 [0] : vector<16x32xf32> to vector<32xf32>
    %120 = vector.shape_cast %119 : vector<32xf32> to vector<1x32xf32>
    %cst_41 = arith.constant 1.500000e+01 : f32
    %121 = vector.broadcast %cst_41 : f32 to vector<1x32xf32>
    %122 = arith.divf %120, %121 : vector<1x32xf32>
    %123 = math.sqrt %122 : vector<1x32xf32>
    %124 = vector.broadcast %109 : vector<16x1xf32> to vector<16x32xf32>
    %125 = arith.mulf %124, %79 : vector<16x32xf32>
    %126 = vector.broadcast %111 : vector<16x1xf32> to vector<16x32xf32>
    %127 = vector.broadcast %115 : vector<1x32xf32> to vector<16x32xf32>
    %128 = arith.mulf %126, %127 : vector<16x32xf32>
    %129 = arith.addf %125, %128 : vector<16x32xf32>
    %130 = vector.broadcast %111 : vector<16x1xf32> to vector<16x32xf32>
    %131 = vector.broadcast %123 : vector<1x32xf32> to vector<16x32xf32>
    %132 = arith.mulf %130, %131 : vector<16x32xf32>
    %133 = arith.mulf %3, %132 : vector<16x32xf32>
    %134 = arith.addf %129, %133 : vector<16x32xf32>
    %c0_42 = arith.constant 0 : index
    %c0_43 = arith.constant 0 : index
    %135 = vector.load %arg2[%c0_42, %c0_43] : memref<2x16xf32, #tpu.memory_space<vmem>>, vector<2x16xf32>
    %cst_44 = arith.constant dense<0.000000e+00> : vector<2x32xf32>
    %136 = tpu.matmul %135, %134, %cst_44 {dimension_numbers = #tpu.dot_dimension_numbers<[1], [0], [0], [1], [0, 0, 1, 1], [], []>} : vector<2x16xf32>, vector<16x32xf32>, vector<2x32xf32> -> vector<2x32xf32>
    %cst_45 = arith.constant 1.000000e-07 : f32
    %137 = vector.broadcast %cst_45 : f32 to vector<1x32xf32>
    %138 = arith.addf %123, %137 : vector<1x32xf32>
    %139 = arith.mulf %132, %132 : vector<16x32xf32>
    %cst_46 = arith.constant 5.000000e-01 : f32
    %140 = vector.broadcast %cst_46 : f32 to vector<16x32xf32>
    %141 = arith.mulf %140, %139 : vector<16x32xf32>
    %142 = arith.mulf %138, %138 : vector<1x32xf32>
    %143 = vector.broadcast %142 : vector<1x32xf32> to vector<16x32xf32>
    %144 = arith.divf %141, %143 : vector<16x32xf32>
    %145 = vector.broadcast %109 : vector<16x1xf32> to vector<16x32xf32>
    %146 = arith.mulf %145, %117 : vector<16x32xf32>
    %147 = vector.broadcast %138 : vector<1x32xf32> to vector<16x32xf32>
    %148 = arith.divf %146, %147 : vector<16x32xf32>
    %149 = arith.mulf %148, %148 : vector<16x32xf32>
    %cst_47 = arith.constant dense<0.000000e+00> : vector<32xf32>
    %150 = vector.multi_reduction <add>, %149, %cst_47 [0] : vector<16x32xf32> to vector<32xf32>
    %151 = vector.shape_cast %150 : vector<32xf32> to vector<1x32xf32>
    %152 = vector.broadcast %151 : vector<1x32xf32> to vector<16x32xf32>
    %153 = arith.addf %144, %152 : vector<16x32xf32>
    %cst_48 = arith.constant dense<0.000000e+00> : vector<16xf32>
    %154 = vector.multi_reduction <add>, %153, %cst_48 [1] : vector<16x32xf32> to vector<16xf32>
    %155 = vector.shape_cast %154 : vector<16xf32> to vector<16x1xf32>
    %cst_49 = arith.constant 3.200000e+01 : f32
    %156 = vector.broadcast %cst_49 : f32 to vector<16x1xf32>
    %157 = arith.divf %155, %156 : vector<16x1xf32>
    %cst_50 = arith.constant dense<0.000000e+00> : vector<1xf32>
    %158 = vector.multi_reduction <add>, %157, %cst_50 [0] : vector<16x1xf32> to vector<1xf32>
    %159 = vector.shape_cast %158 : vector<1xf32> to vector<1x1xf32>
    %cst_51 = arith.constant 1.600000e+01 : f32
    %160 = vector.broadcast %cst_51 : f32 to vector<1x1xf32>
    %161 = arith.divf %159, %160 : vector<1x1xf32>
    %cst_52 = arith.constant dense<0.000000e+00> : vector<16x2xf32>
    %162 = tpu.matmul %5, %98, %cst_52 {dimension_numbers = #tpu.dot_dimension_numbers<[1], [0], [0], [1], [0, 0, 1, 1], [], []>} : vector<16x16xf32>, vector<16x2xf32>, vector<16x2xf32> -> vector<16x2xf32>
    %cst_53 = arith.constant dense<0.000000e+00> : vector<2x2xf32>
    %163 = tpu.matmul %98, %162, %cst_53 {dimension_numbers = #tpu.dot_dimension_numbers<[0], [0], [1], [1], [0, 1, 1, 1], [], []>} : vector<16x2xf32>, vector<16x2xf32>, vector<2x2xf32> -> vector<2x2xf32>
    %164 = math.absf %163 : vector<2x2xf32>
    %cst_54 = arith.constant dense<0.000000e+00> : vector<2xf32>
    %165 = vector.multi_reduction <add>, %164, %cst_54 [0] : vector<2x2xf32> to vector<2xf32>
    %166 = vector.shape_cast %165 : vector<2xf32> to vector<1x2xf32>
    %cst_55 = arith.constant 9.99999996E-13 : f32
    %167 = vector.broadcast %cst_55 : f32 to vector<1x2xf32>
    %168 = arith.maximumf %166, %167 : vector<1x2xf32>
    %169 = tpu.iota {dimensions = array<i32: 0>} : vector<2x2xi32>
    %170 = tpu.iota {dimensions = array<i32: 1>} : vector<2x2xi32>
    %171 = arith.cmpi eq, %169, %170 : vector<2x2xi32>
    %cst_56 = arith.constant 0.000000e+00 : f32
    %172 = vector.broadcast %cst_56 : f32 to vector<2x2xf32>
    %173 = arith.select %171, %163, %172 : vector<2x2xi1>, vector<2x2xf32>
    %cst_57 = arith.constant dense<0.000000e+00> : vector<2xf32>
    %174 = vector.multi_reduction <add>, %173, %cst_57 [0] : vector<2x2xf32> to vector<2xf32>
    %175 = vector.shape_cast %174 : vector<2xf32> to vector<1x2xf32>
    %176 = arith.divf %175, %168 : vector<1x2xf32>
    %cst_58 = arith.constant 1.000000e+00 : f32
    %177 = vector.broadcast %cst_58 : f32 to vector<1x2xf32>
    %178 = arith.subf %176, %177 : vector<1x2xf32>
    %179 = arith.mulf %178, %178 : vector<1x2xf32>
    %cst_59 = arith.constant dense<0.000000e+00> : vector<1xf32>
    %180 = vector.multi_reduction <add>, %179, %cst_59 [1] : vector<1x2xf32> to vector<1xf32>
    %181 = vector.shape_cast %180 : vector<1xf32> to vector<1x1xf32>
    %cst_60 = arith.constant 5.000000e-01 : f32
    %182 = vector.broadcast %cst_60 : f32 to vector<1x1xf32>
    %183 = arith.mulf %181, %182 : vector<1x1xf32>
    %c208 = arith.constant 208 : index
    %c0_61 = arith.constant 0 : index
    %184 = vector.load %arg3[%c208, %c0_61] : memref<328x128xf32, #tpu.memory_space<vmem>>, vector<6x32xf32>
    %cst_62 = arith.constant dense<0.000000e+00> : vector<2x6xf32>
    %185 = tpu.matmul %136, %184, %cst_62 {dimension_numbers = #tpu.dot_dimension_numbers<[1], [1], [0], [0], [0, 0, 1, 0], [], []>} : vector<2x32xf32>, vector<6x32xf32>, vector<2x6xf32> -> vector<2x6xf32>
    %186 = arith.mulf %136, %136 : vector<2x32xf32>
    %cst_63 = arith.constant dense<0.000000e+00> : vector<2xf32>
    %187 = vector.multi_reduction <add>, %186, %cst_63 [1] : vector<2x32xf32> to vector<2xf32>
    %188 = vector.shape_cast %187 : vector<2xf32> to vector<2x1xf32>
    %cst_64 = arith.constant -2.000000e+00 : f32
    %189 = vector.broadcast %cst_64 : f32 to vector<2x6xf32>
    %190 = arith.mulf %189, %185 : vector<2x6xf32>
    %191 = vector.broadcast %188 : vector<2x1xf32> to vector<2x6xf32>
    %192 = arith.addf %190, %191 : vector<2x6xf32>
    %193 = vector.broadcast %13 : vector<1x6xf32> to vector<2x6xf32>
    %194 = arith.addf %192, %193 : vector<2x6xf32>
    %cst_65 = arith.constant 0.000000e+00 : f32
    %195 = vector.broadcast %cst_65 : f32 to vector<2x6xf32>
    %196 = arith.maximumf %194, %195 : vector<2x6xf32>
    %cst_66 = arith.constant 1.000000e+00 : f32
    %197 = vector.broadcast %cst_66 : f32 to vector<2x6xf32>
    %198 = arith.addf %196, %197 : vector<2x6xf32>
    %cst_67 = arith.constant 9.99999974E-5 : f32
    %199 = vector.broadcast %cst_67 : f32 to vector<2x6xf32>
    %200 = arith.addf %196, %199 : vector<2x6xf32>
    %201 = arith.divf %198, %200 : vector<2x6xf32>
    %202 = math.log %201 : vector<2x6xf32>
    %c216 = arith.constant 216 : index
    %c0_68 = arith.constant 0 : index
    %203 = vector.load %arg3[%c216, %c0_68] : memref<328x128xf32, #tpu.memory_space<vmem>>, vector<6x32xf32>
    %cst_69 = arith.constant dense<0.000000e+00> : vector<2x32xf32>
    %204 = tpu.matmul %202, %203, %cst_69 {dimension_numbers = #tpu.dot_dimension_numbers<[1], [0], [0], [1], [0, 0, 1, 1], [], []>} : vector<2x6xf32>, vector<6x32xf32>, vector<2x32xf32> -> vector<2x32xf32>
    %c176 = arith.constant 176 : index
    %c0_70 = arith.constant 0 : index
    %205 = vector.load %arg3[%c176, %c0_70] : memref<328x128xf32, #tpu.memory_space<vmem>>, vector<32x32xf32>
    %cst_71 = arith.constant dense<0.000000e+00> : vector<2x32xf32>
    %206 = tpu.matmul %136, %205, %cst_71 {dimension_numbers = #tpu.dot_dimension_numbers<[1], [0], [0], [1], [0, 0, 1, 1], [], []>} : vector<2x32xf32>, vector<32x32xf32>, vector<2x32xf32> -> vector<2x32xf32>
    %207 = arith.addf %204, %206 : vector<2x32xf32>
    %208 = vector.extract_strided_slice %207 {offsets = [0, 0], sizes = [2, 2], strides = [1, 1]} : vector<2x32xf32> to vector<2x2xf32>
    %cst_72 = arith.constant dense<0xFF800000> : vector<2xf32>
    %209 = vector.multi_reduction <maximumf>, %208, %cst_72 [1] : vector<2x2xf32> to vector<2xf32>
    %210 = vector.shape_cast %209 : vector<2xf32> to vector<2x1xf32>
    %211 = vector.broadcast %210 : vector<2x1xf32> to vector<2x2xf32>
    %212 = arith.subf %208, %211 : vector<2x2xf32>
    %213 = math.exp %212 : vector<2x2xf32>
    %cst_73 = arith.constant dense<0.000000e+00> : vector<2xf32>
    %214 = vector.multi_reduction <add>, %213, %cst_73 [1] : vector<2x2xf32> to vector<2xf32>
    %215 = vector.shape_cast %214 : vector<2xf32> to vector<2x1xf32>
    %216 = vector.broadcast %215 : vector<2x1xf32> to vector<2x2xf32>
    %217 = arith.divf %213, %216 : vector<2x2xf32>
    %c232 = arith.constant 232 : index
    %c0_74 = arith.constant 0 : index
    %218 = vector.load %arg3[%c232, %c0_74] : memref<328x128xf32, #tpu.memory_space<vmem>>, vector<32x128xf32>
    %cst_75 = arith.constant dense<0.000000e+00> : vector<16x128xf32>
    %219 = tpu.matmul %79, %218, %cst_75 {dimension_numbers = #tpu.dot_dimension_numbers<[1], [0], [0], [1], [0, 0, 1, 1], [], []>} : vector<16x32xf32>, vector<32x128xf32>, vector<16x128xf32> -> vector<16x128xf32>
    %c264 = arith.constant 264 : index
    %c0_76 = arith.constant 0 : index
    %220 = vector.load %arg3[%c264, %c0_76] : memref<328x128xf32, #tpu.memory_space<vmem>>, vector<2x128xf32>
    %cst_77 = arith.constant dense<0.000000e+00> : vector<16x128xf32>
    %221 = tpu.matmul %89, %220, %cst_77 {dimension_numbers = #tpu.dot_dimension_numbers<[1], [0], [0], [1], [0, 0, 1, 1], [], []>} : vector<16x2xf32>, vector<2x128xf32>, vector<16x128xf32> -> vector<16x128xf32>
    %222 = arith.addf %219, %221 : vector<16x128xf32>
    %c272 = arith.constant 272 : index
    %c0_78 = arith.constant 0 : index
    %223 = vector.load %arg3[%c272, %c0_78] : memref<328x128xf32, #tpu.memory_space<vmem>>, vector<1x128xf32>
    %224 = vector.broadcast %109 : vector<16x1xf32> to vector<16x128xf32>
    %225 = vector.broadcast %223 : vector<1x128xf32> to vector<16x128xf32>
    %226 = arith.mulf %224, %225 : vector<16x128xf32>
    %227 = arith.addf %222, %226 : vector<16x128xf32>
    %c0_79 = arith.constant 0 : index
    %c0_80 = arith.constant 0 : index
    %228 = vector.load %arg4[%c0_79, %c0_80] : memref<16x128xf32, #tpu.memory_space<vmem>>, vector<16x128xf32>
    tpu.vector_store %arg4[%c0_79, %c0_80], %227 {strides = array<i32>} : memref<16x128xf32, #tpu.memory_space<vmem>>, vector<16x128xf32>,
    %cst_81 = arith.constant dense<0.000000e+00> : vector<2x128xf32>
    %229 = tpu.matmul %136, %218, %cst_81 {dimension_numbers = #tpu.dot_dimension_numbers<[1], [0], [0], [1], [0, 0, 1, 1], [], []>} : vector<2x32xf32>, vector<32x128xf32>, vector<2x128xf32> -> vector<2x128xf32>
    %c280 = arith.constant 280 : index
    %c0_82 = arith.constant 0 : index
    %230 = vector.load %arg3[%c280, %c0_82] : memref<328x128xf32, #tpu.memory_space<vmem>>, vector<6x128xf32>
    %cst_83 = arith.constant dense<0.000000e+00> : vector<2x128xf32>
    %231 = tpu.matmul %202, %230, %cst_83 {dimension_numbers = #tpu.dot_dimension_numbers<[1], [0], [0], [1], [0, 0, 1, 1], [], []>} : vector<2x6xf32>, vector<6x128xf32>, vector<2x128xf32> -> vector<2x128xf32>
    %232 = arith.addf %229, %231 : vector<2x128xf32>
    %c288 = arith.constant 288 : index
    %c0_84 = arith.constant 0 : index
    %233 = vector.load %arg3[%c288, %c0_84] : memref<328x128xf32, #tpu.memory_space<vmem>>, vector<6x128xf32>
    %cst_85 = arith.constant dense<0.000000e+00> : vector<2x128xf32>
    %234 = tpu.matmul %196, %233, %cst_85 {dimension_numbers = #tpu.dot_dimension_numbers<[1], [0], [0], [1], [0, 0, 1, 1], [], []>} : vector<2x6xf32>, vector<6x128xf32>, vector<2x128xf32> -> vector<2x128xf32>
    %235 = arith.addf %232, %234 : vector<2x128xf32>
    %c296 = arith.constant 296 : index
    %c0_86 = arith.constant 0 : index
    %236 = vector.load %arg3[%c296, %c0_86] : memref<328x128xf32, #tpu.memory_space<vmem>>, vector<2x128xf32>
    %cst_87 = arith.constant dense<0.000000e+00> : vector<2x128xf32>
    %237 = tpu.matmul %208, %236, %cst_87 {dimension_numbers = #tpu.dot_dimension_numbers<[1], [0], [0], [1], [0, 0, 1, 1], [], []>} : vector<2x2xf32>, vector<2x128xf32>, vector<2x128xf32> -> vector<2x128xf32>
    %238 = arith.addf %235, %237 : vector<2x128xf32>
    %c304 = arith.constant 304 : index
    %c0_88 = arith.constant 0 : index
    %239 = vector.load %arg3[%c304, %c0_88] : memref<328x128xf32, #tpu.memory_space<vmem>>, vector<2x128xf32>
    %cst_89 = arith.constant dense<0.000000e+00> : vector<2x128xf32>
    %240 = tpu.matmul %217, %239, %cst_89 {dimension_numbers = #tpu.dot_dimension_numbers<[1], [0], [0], [1], [0, 0, 1, 1], [], []>} : vector<2x2xf32>, vector<2x128xf32>, vector<2x128xf32> -> vector<2x128xf32>
    %241 = arith.addf %238, %240 : vector<2x128xf32>
    %c312 = arith.constant 312 : index
    %c0_90 = arith.constant 0 : index
    %242 = vector.load %arg3[%c312, %c0_90] : memref<328x128xf32, #tpu.memory_space<vmem>>, vector<1x128xf32>
    %243 = vector.broadcast %161 : vector<1x1xf32> to vector<1x128xf32>
    %244 = arith.mulf %243, %242 : vector<1x128xf32>
    %245 = vector.broadcast %244 : vector<1x128xf32> to vector<2x128xf32>
    %246 = arith.addf %241, %245 : vector<2x128xf32>
    %c320 = arith.constant 320 : index
    %c0_91 = arith.constant 0 : index
    %247 = vector.load %arg3[%c320, %c0_91] : memref<328x128xf32, #tpu.memory_space<vmem>>, vector<1x128xf32>
    %248 = vector.broadcast %183 : vector<1x1xf32> to vector<1x128xf32>
    %249 = arith.mulf %248, %247 : vector<1x128xf32>
    %250 = vector.broadcast %249 : vector<1x128xf32> to vector<2x128xf32>
    %251 = arith.addf %246, %250 : vector<2x128xf32>
    %c0_92 = arith.constant 0 : index
    %c0_93 = arith.constant 0 : index
    %252 = vector.load %arg5[%c0_92, %c0_93] : memref<2x128xf32, #tpu.memory_space<vmem>>, vector<2x128xf32>
    tpu.vector_store %arg5[%c0_92, %c0_93], %251 {strides = array<i32>} : memref<2x128xf32, #tpu.memory_space<vmem>>, vector<2x128xf32>,
    return
  }
}

</mosaic_0001>

<bundles_post_ra>
// kernel: tpu_custom_call.1
= control target key start
LH: loop header
LB: loop body
LE: loop exit
PB: predicated region body
PF: predicated region fallthrough
CT: control target
= control target key end

     0   :  { %11 = vsyncpa [#allocation3], 0  ;;  %s1786_s0 = inlined_call_operand.hbm [shape: f32[16,64], index: 0, kind: input, shape index: {}]   ;;  %s1787_s1 = inlined_call_operand.hbm [shape: bf16[16,16], index: 1, kind: input, shape index: {}]   ;;  %s1788_s2 = inlined_call_operand.hbm [shape: f32[2,16], index: 2, kind: input, shape index: {}]   ;;  %s1789_s3 = inlined_call_operand.hbm [shape: f32[328,128], index: 3, kind: input, shape index: {}]   ;;  %s1790_s4 = inlined_call_operand.hbm [shape: f32[16,128], index: 4, kind: output, shape index: {0}]   ;;  %s1791_s5 = inlined_call_operand.hbm [shape: f32[2,128], index: 5, kind: output, shape index: {1}]  }
   0x1   :  { %12 = vsyncpa [#allocation6], 0 }
   0x2   :  { %13 = vsyncpa [#allocation9], 0 }
   0x3   :  { %14 = vsyncpa [#allocation4], 0  ;;  %s33_s20 = sshll.u32 %s1787_s1, 4  ;;  %s34_s20 = int_to_ptr.hbm [resolvable:$true] %s33_s20 }
   0x4   :  { %15 = vsyncpa [#allocation12], 0  ;;  %s1514_s21 = smov [#allocation5]   ;;  %s20_s25 = sshll.u32 %s1786_s0, 4  ;;  %s21_s25 = int_to_ptr.hbm [resolvable:$true] %s20_s25 }
   0x5   :  { %s35_s22 = sshll.u32 %s1514_s21, 4  ;;  %s1515_s26 = smov 64   ;;  %s36_s22 = int_to_ptr.vmem [resolvable:$true] %s35_s22 }
   0x6   :  { %s1516_s27 = smov 4   ;;  %s1517_s28 = smov [#allocation2]  }
   0x7   :  { %41 = dma.hbm_to_vmem [thread:$0]  %s34_s20, 128, %s36_s22, [#allocation6], %s1515_s26, %s1515_s26, %s1516_s27  }
   0x8   :  { %s22_s29 = sshll.u32 %s1517_s28, 4  ;;  %s1518_s30 = smov 128   ;;  %s23_s29 = int_to_ptr.vmem [resolvable:$true] %s22_s29 }
   0x9   :  { %s1519_s6 = smov 8   ;;  %s47_s8 = sshll.u32 %s1788_s2, 4  ;;  %s48_s8 = int_to_ptr.hbm [resolvable:$true] %s47_s8 }
   0xa   :  { %28 = dma.hbm_to_vmem [thread:$0]  %s21_s25, 256, %s23_s29, [#allocation3], %s1518_s30, %s1518_s30, %s1519_s6  }
   0xb   :  { %s1520_s9 = smov [#allocation7]   ;;  %s57_s12 = sshll.u32 %s1789_s3, 4  ;;  %s58_s12 = int_to_ptr.hbm [resolvable:$true] %s57_s12 }
   0xc   :  { %s49_s0 = sshll.u32 %s1520_s9, 4  ;;  %s1521_s13 = smov [#allocation8]   ;;  %s50_s0 = int_to_ptr.vmem [resolvable:$true] %s49_s0 }
   0xd   :  { %52 = dma.hbm_to_vmem [thread:$0]  %s48_s8, 32, %s50_s0, [#allocation6]  }
   0xe   :  { %s59_s14 = sshll.u32 %s1521_s13, 4  ;;  %s60_s14 = int_to_ptr.vmem [resolvable:$true] %s59_s14 }
   0xf   :  { %65 = dma.hbm_to_vmem [thread:$0]  %s58_s12, 5248, %s60_s14, [#allocation9], %s1518_s30, %s1518_s30, %s1519_s6  }
  0x10   :  { %1504 = dma.done.wait [#allocation3], 256  }
  0x11   :  { %1505 = vsyncadd [#allocation3], 4294967040 }
  0x12   :  { %1506 = dma.done.wait [#allocation6], 160  }
  0x13   :  { %1507 = vsyncadd [#allocation6], 4294967136 }
  0x14   :  { %1508 = dma.done.wait [#allocation9], 5248  }
  0x15   :  { %1509 = vsyncadd [#allocation9], 4294962048  ;;  %v1579_v0 = vld [vmem:[#allocation2 + $0x8] sm:$0xff]  ;;  %v1581_v1 = vld [vmem:[#allocation2] sm:$0xff]  ;;  %vm95_vm0 = vcmask 130048   ;;  %vm158_vm1 = vcmask 261120  }
  0x16   :  { %v1289_v2 = vld [vmem:[#allocation5] sm:$0xff]   ;;  %116 = vmatpush.msra.mxu0 %v1579_v0  ;;  %v90_v5 = vld [vmem:[#allocation8 + $0x8] sm:$0xff]  ;;  %v89_v6 = vld [vmem:[#allocation8] sm:$0xff]  ;;  %v1522_v19 = vmov 16.0   ;;  %vm450_vm9 = vcmask 15360   ;;  %s1523_s2 = smov 112  }
  0x17   :  { %v1584_v3 = vunpack.c.l.bf16 %v1289_v2  ;;  %v1589_v4 = vunpack.c.h.bf16 %v1289_v2  ;;  %147 = vmatpush.msra.mxu1 %v90_v5  ;;  %v94_v7 = vld [vmem:[#allocation8 + $0x28] sm:$0xff]  ;;  %v93_v8 = vld [vmem:[#allocation8 + $0x20] sm:$0xff]  ;;  %v92_v13 = vld [vmem:[#allocation8 + $0x18] sm:$0xff]  ;;  %1314 = vrcp.f32 %v1522_v19  ;;  %503 = vrot.lane.b32.xlu2 %v1579_v0, %s1523_s2  ;;  %s1526_s3 = smov 32   ;;  %s1527_s15 = smov 96  }
  0x18   :  { %117 = vmatpush.msra.mxu0 %v1581_v1  ;;  %177 = vmatpush.msra.mxu2 %v94_v7  ;;  %v91_v14 = vld [vmem:[#allocation8 + $0x10] sm:$0xff]  ;;  %v245_v55 = vld [vmem:[#allocation8 + $0x48] sm:$0xff]  ;;  %v244_v56 = vld [vmem:[#allocation8 + $0x40] sm:$0xff]  ;;  %s1528_s16 = smov [#allocation10]   ;;  %s1217_s20 = sshll.u32 %s1790_s4, 4  ;;  %s1218_s20 = int_to_ptr.hbm [resolvable:$true] %s1217_s20 }
  0x19   :  { %1248 = vmatmul.msk.f32.vlgmr.msra.gmra.mxu0 %vm95_vm0, %v1584_v3  ;;  %148 = vmatpush.msra.mxu1 %v89_v6  ;;  %v1607_v62 = vld [vmem:[#allocation8 + $0xe0] sm:$0xff]  ;;  %s1215_s17 = sshll.u32 %s1528_s16, 4  ;;  %s1530_s4 = smov [#allocation11]   ;;  %s1216_s17 = int_to_ptr.vmem [resolvable:$true] %s1215_s17 }
  0x1a   :  { %178 = vmatpush.msra.mxu2 %v93_v8  ;;  %293 = vmatpush.msrb.mxu0 %v245_v55  ;;  %v234_v2 = vperm.slane %v1607_v62, 0  ;;  %v237_v7 = vperm.slane %v1607_v62, 1  ;;  %s1229_s21 = sshll.u32 %s1530_s4, 4  ;;  %s1231_s24 = sshll.u32 %s1791_s5, 4  ;;  %s1230_s21 = int_to_ptr.vmem [resolvable:$true] %s1229_s21  ;;  %s1232_s24 = int_to_ptr.hbm [resolvable:$true] %s1231_s24 }
  0x1c   :  { %179 = vmatpush.msra.mxu2 %v92_v13  ;;  %294 = vmatpush.msrb.mxu0 %v244_v56  ;;  %v381_v56 = vld [vmem:[#allocation8 + $0x78] sm:$0xff] }
  0x1d   :  { %v1315_v21 = vpop.eup %1314 }
  0x1e   :  { %180 = vmatpush.msra.mxu2 %v91_v14  ;;  %v200_v23 = vmul.f32 16.0, %v1315_v21  ;;  %vm204_vm2 = vweird.f32 %v1315_v21 }
  0x1f   :  { %501 = vrot.lane.b32.xlu2 %v1581_v1, %s1523_s2 }
  0x20   :  { %v201_v28 = vsub.f32 1.0, %v200_v23  ;;  %v247_v23 = vld [vmem:[#allocation8 + $0x58] sm:$0xff] }
  0x21   :  { %1249 = vmatmul.msk.f32.gmra.mxu0 %vm95_vm0, %v1589_v4 }
  0x22   :  { %v202_v31 = vmul.f32 %v1315_v21, %v201_v28 }
  0x24   :  { %v203_v34 = vadd.f32 %v1315_v21, %v202_v31 }
  0x26   :  { %v1601_v37 = vsel %vm204_vm2, %v1315_v21, %v203_v34 }
  0x96   :  { %v119_v9 = vpop.f32.mrf.mxu0 }
  0x97   :  { %v125_v10 = vadd.f32 %v119_v9, %v1581_v1 }
  0x99   :  { %1250 = vmatmul.msk.f32.vlgmr.msra.gmra.mxu1 %vm95_vm0, %v125_v10 }
  0x9e   :  { %v122_v11 = vpop.f32.mrf.mxu0 }
  0x9f   :  { %v126_v12 = vadd.f32 %v122_v11, %v1579_v0 }
  0xa1   :  { %1251 = vmatmul.msk.f32.gmra.mxu1 %vm95_vm0, %v126_v12 }
 0x116   :  { %v150_v15 = vpop.f32.mrf.mxu1 }
 0x117   :  { %v156_v16 = vmax.f32 %v150_v15, 0.0  ;;  %v243_v15 = vld [vmem:[#allocation8 + $0x38] sm:$0xff] }
 0x118   :  { %295 = vmatpush.msrb.mxu0 %v243_v15 }
 0x119   :  { %1252 = vmatmul.msk.f32.vlgmr.msra.gmra.mxu2 %vm158_vm1, %v156_v16  ;;  %v242_v16 = vld [vmem:[#allocation8 + $0x30] sm:$0xff] }
 0x11a   :  { %296 = vmatpush.msrb.mxu0 %v242_v16 }
 0x11e   :  { %v153_v17 = vpop.f32.mrf.mxu1 }
 0x11f   :  { %v157_v18 = vmax.f32 %v153_v17, 0.0  ;;  %v249_v17 = vld [vmem:[#allocation8 + $0x68] sm:$0xff] }
 0x120   :  { %324 = vmatpush.msrb.mxu1 %v249_v17 }
 0x121   :  { %1253 = vmatmul.msk.f32.gmra.mxu2 %vm158_vm1, %v157_v18  ;;  %v248_v18 = vld [vmem:[#allocation8 + $0x60] sm:$0xff] }
 0x122   :  { %325 = vmatpush.msrb.mxu1 %v248_v18 }
 0x124   :  { %326 = vmatpush.msrb.mxu1 %v247_v23  ;;  %v384_v23 = vperm.slane %v1607_v62, 4 }
 0x19c   :  { %v182_v20 = vpop.f32.mrf.mxu2 }
 0x19d   :  { %v188_v22 = vmax.f32 %v182_v20, 0.0 }
 0x19f   :  { %v190_v26 = vsel %vm158_vm1, %v188_v22, 0.0 }
 0x1a4   :  { %v185_v24 = vpop.f32.mrf.mxu2 }
 0x1a5   :  { %v189_v25 = vmax.f32 %v185_v24, 0.0  ;;  %v246_v24 = vld [vmem:[#allocation8 + $0x50] sm:$0xff] }
 0x1a6   :  { %327 = vmatpush.msrb.mxu1 %v246_v24 }
 0x1a7   :  { %v191_v27 = vsel %vm158_vm1, %v189_v25, 0.0 }
 0x1a8   :  { %v192_v29 = vadd.f32 %v191_v27, %v190_v26 }
 0x1aa   :  { %v193_v30 = vrot.slane %v192_v29, 4 }
 0x1ac   :  { %v194_v32 = vadd.f32 %v193_v30, %v192_v29 }
 0x1ae   :  { %v195_v33 = vrot.slane %v194_v32, 2 }
 0x1b0   :  { %v196_v35 = vadd.f32 %v195_v33, %v194_v32 }
 0x1b2   :  { %v197_v36 = vrot.slane %v196_v35, 1 }
 0x1b4   :  { %v198_v38 = vadd.f32 %v197_v36, %v196_v35 }
 0x1b6   :  { %v206_v39 = vmul.f32 %v1601_v37, %v198_v38 }
 0x1b8   :  { %v207_v40 = vsub.f32 %v188_v22, %v206_v39  ;;  %v208_v41 = vsub.f32 %v189_v25, %v206_v39 }
 0x1ba   :  { %v209_v42 = vmul.f32 %v207_v40, %v207_v40  ;;  %v210_v43 = vmul.f32 %v208_v41, %v208_v41 }
 0x1bc   :  { %v211_v44 = vsel %vm158_vm1, %v209_v42, 0.0  ;;  %v212_v45 = vsel %vm158_vm1, %v210_v43, 0.0 }
 0x1bd   :  { %v213_v46 = vadd.f32 %v212_v45, %v211_v44 }
 0x1bf   :  { %v214_v47 = vrot.slane %v213_v46, 4 }
 0x1c1   :  { %v215_v48 = vadd.f32 %v214_v47, %v213_v46 }
 0x1c3   :  { %v216_v49 = vrot.slane %v215_v48, 2 }
 0x1c5   :  { %v217_v50 = vadd.f32 %v216_v49, %v215_v48 }
 0x1c7   :  { %v218_v51 = vrot.slane %v217_v50, 1 }
 0x1c9   :  { %v219_v52 = vadd.f32 %v218_v51, %v217_v50 }
 0x1cb   :  { %v220_v53 = vmul.f32 %v219_v52, %v1601_v37  ;;  %v383_v52 = vld [vmem:[#allocation8 + $0x88] sm:$0xff] }
 0x1cd   :  { %v221_v54 = vadd.f32 1e-05, %v220_v53 }
 0x1cf   :  { %1316 = vrsqrt.f32 %v221_v54  ;;  %vm228_vm4 = vweird.f32 %v221_v54 }
 0x1d5   :  { %v1317_v57 = vpop.eup %1316 }
 0x1d6   :  { %v223_v58 = vmul.f32 %v1317_v57, %v221_v54  ;;  %vm229_vm3 = vweird.f32 %v1317_v57  ;;  %v382_v54 = vld [vmem:[#allocation8 + $0x80] sm:$0xff] }
 0x1d7   :  { %vm230_vm5 = vmor %vm228_vm4, %vm229_vm3 }
 0x1d8   :  { %v224_v59 = vmul.f32 %v1317_v57, %v223_v58  ;;  %v380_v58 = vld [vmem:[#allocation8 + $0x70] sm:$0xff] }
 0x1da   :  { %v225_v60 = vmul.f32 0.5, %v224_v59 }
 0x1dc   :  { %v226_v61 = vsub.f32 1.5, %v225_v60 }
 0x1de   :  { %v227_v63 = vmul.f32 %v1317_v57, %v226_v61 }
 0x1e0   :  { %v231_v5 = vsel %vm230_vm5, %v1317_v57, %v227_v63 }
 0x1e1   :  { %v233_v6 = vmul.f32 %v231_v5, %v208_v41  ;;  %v232_v8 = vmul.f32 %v231_v5, %v207_v40 }
 0x1e3   :  { %v236_v9 = vmul.f32 %v234_v2, %v233_v6  ;;  %v235_v10 = vmul.f32 %v234_v2, %v232_v8 }
 0x1e5   :  { %v239_v11 = vadd.f32 %v237_v7, %v236_v9  ;;  %v238_v12 = vadd.f32 %v237_v7, %v235_v10  ;;  %v374_v10 = vperm.slane %v1607_v62, 2 }
 0x1e7   :  { %v241_v13 = vmax.f32 %v239_v11, 0.0  ;;  %v240_v14 = vmax.f32 %v238_v12, 0.0 }
 0x1e9   :  { %264 = vmatpush.msra.mxu3 %v241_v13 }
 0x1eb   :  { %265 = vmatpush.msra.mxu3 %v240_v14 }
 0x1ec   :  { %1254 = vmatmul.msk.f32.vlgmr.msra.gmra.mxu3 %vm95_vm0, %v1584_v3 }
 0x1ed   :  { %403 = vmatpush.msrb.mxu3 %v383_v52 }
 0x1ef   :  { %404 = vmatpush.msrb.mxu3 %v382_v54 }
 0x1f1   :  { %405 = vmatpush.msrb.mxu3 %v381_v56 }
 0x1f3   :  { %406 = vmatpush.msrb.mxu3 %v380_v58 }
 0x1f4   :  { %1255 = vmatmul.msk.f32.gmra.mxu3 %vm95_vm0, %v1589_v4 }
 0x26f   :  { %v267_v19 = vpop.f32.mrf.mxu3 }
 0x270   :  { %v273_v20 = vadd.f32 %v267_v19, %v240_v14  ;;  %v419_v19 = vld [vmem:[#allocation8 + $0xa8] sm:$0xff] }
 0x271   :  { %439 = vmatpush.msrb.mxu2 %v419_v19 }
 0x272   :  { %1256 = vmatmul.msk.f32.vlgmr.msrb.gmra.mxu0 %vm158_vm1, %v273_v20  ;;  %v418_v20 = vld [vmem:[#allocation8 + $0xa0] sm:$0xff] }
 0x273   :  { %440 = vmatpush.msrb.mxu2 %v418_v20 }
 0x277   :  { %v270_v21 = vpop.f32.mrf.mxu3 }
 0x278   :  { %v274_v22 = vadd.f32 %v270_v21, %v241_v13  ;;  %v377_v13 = vperm.slane %v1607_v62, 3  ;;  %v417_v21 = vld [vmem:[#allocation8 + $0x98] sm:$0xff] }
 0x279   :  { %441 = vmatpush.msrb.mxu2 %v417_v21 }
 0x27a   :  { %1257 = vmatmul.msk.f32.gmra.mxu0 %vm158_vm1, %v274_v22  ;;  %v416_v22 = vld [vmem:[#allocation8 + $0x90] sm:$0xff] }
 0x27b   :  { %442 = vmatpush.msrb.mxu2 %v416_v22 }
 0x2ef   :  { %v298_v25 = vpop.f32.mrf.mxu0 }
 0x2f0   :  { %v304_v26 = vmax.f32 %v298_v25, 0.0 }
 0x2f2   :  { %1258 = vmatmul.msk.f32.vlgmr.msrb.gmra.mxu1 %vm158_vm1, %v304_v26 }
 0x2f7   :  { %v301_v27 = vpop.f32.mrf.mxu0 }
 0x2f8   :  { %v305_v28 = vmax.f32 %v301_v27, 0.0 }
 0x2fa   :  { %1259 = vmatmul.msk.f32.gmra.mxu1 %vm158_vm1, %v305_v28 }
 0x36f   :  { %v329_v29 = vpop.f32.mrf.mxu1 }
 0x370   :  { %v335_v30 = vmax.f32 %v329_v29, 0.0 }
 0x372   :  { %v337_v33 = vsel %vm158_vm1, %v335_v30, 0.0 }
 0x377   :  { %v332_v31 = vpop.f32.mrf.mxu1 }
 0x378   :  { %v336_v32 = vmax.f32 %v332_v31, 0.0  ;;  %v420_v31 = vperm.slane %v1607_v62, 5 }
 0x37a   :  { %v338_v34 = vsel %vm158_vm1, %v336_v32, 0.0 }
 0x37b   :  { %v339_v35 = vadd.f32 %v338_v34, %v337_v33 }
 0x37d   :  { %v340_v36 = vrot.slane %v339_v35, 4 }
 0x37f   :  { %v341_v38 = vadd.f32 %v340_v36, %v339_v35 }
 0x381   :  { %v342_v39 = vrot.slane %v341_v38, 2 }
 0x383   :  { %v343_v40 = vadd.f32 %v342_v39, %v341_v38 }
 0x385   :  { %v344_v41 = vrot.slane %v343_v40, 1 }
 0x387   :  { %v345_v42 = vadd.f32 %v344_v41, %v343_v40 }
 0x389   :  { %v346_v43 = vmul.f32 %v345_v42, %v1601_v37 }
 0x38b   :  { %v347_v44 = vsub.f32 %v335_v30, %v346_v43  ;;  %v348_v45 = vsub.f32 %v336_v32, %v346_v43 }
 0x38d   :  { %v349_v46 = vmul.f32 %v347_v44, %v347_v44  ;;  %v350_v47 = vmul.f32 %v348_v45, %v348_v45 }
 0x38f   :  { %v351_v48 = vsel %vm158_vm1, %v349_v46, 0.0  ;;  %v352_v49 = vsel %vm158_vm1, %v350_v47, 0.0 }
 0x390   :  { %v353_v50 = vadd.f32 %v352_v49, %v351_v48 }
 0x392   :  { %v354_v51 = vrot.slane %v353_v50, 4 }
 0x394   :  { %v355_v53 = vadd.f32 %v354_v51, %v353_v50 }
 0x396   :  { %v356_v55 = vrot.slane %v355_v53, 2 }
 0x398   :  { %v357_v57 = vadd.f32 %v356_v55, %v355_v53 }
 0x39a   :  { %v358_v59 = vrot.slane %v357_v57, 1 }
 0x39c   :  { %v359_v60 = vadd.f32 %v358_v59, %v357_v57  ;;  %v504_v59 = vpop.permute.xlu2 %503 }
 0x39e   :  { %v360_v61 = vmul.f32 %v359_v60, %v1601_v37 }
 0x3a0   :  { %v361_v63 = vadd.f32 1e-05, %v360_v61 }
 0x3a2   :  { %1318 = vrsqrt.f32 %v361_v63  ;;  %vm368_vm7 = vweird.f32 %v361_v63 }
 0x3a8   :  { %v1319_v2 = vpop.eup %1318 }
 0x3a9   :  { %v363_v5 = vmul.f32 %v1319_v2, %v361_v63  ;;  %vm369_vm6 = vweird.f32 %v1319_v2 }
 0x3aa   :  { %vm370_vm8 = vmor %vm368_vm7, %vm369_vm6 }
 0x3ab   :  { %v364_v6 = vmul.f32 %v1319_v2, %v363_v5 }
 0x3ad   :  { %v365_v7 = vmul.f32 0.5, %v364_v6 }
 0x3af   :  { %v366_v8 = vsub.f32 1.5, %v365_v7 }
 0x3b1   :  { %v367_v9 = vmul.f32 %v1319_v2, %v366_v8 }
 0x3b3   :  { %v371_v11 = vsel %vm370_vm8, %v1319_v2, %v367_v9 }
 0x3b4   :  { %v372_v12 = vmul.f32 %v371_v11, %v347_v44  ;;  %v373_v15 = vmul.f32 %v371_v11, %v348_v45 }
 0x3b6   :  { %v375_v14 = vmul.f32 %v374_v10, %v372_v12  ;;  %v376_v17 = vmul.f32 %v374_v10, %v373_v15 }
 0x3b8   :  { %v1627_v16 = vadd.f32 %v377_v13, %v375_v14  ;;  %v1631_v18 = vadd.f32 %v377_v13, %v376_v17  ;;  %v502_v14 = vpop.permute.xlu2 %501 }
 0x3ba   :  { %1260 = vmatmul.msk.f32.vlgmr.msrb.gmra.mxu3 %vm158_vm1, %v1627_v16 }
 0x3c2   :  { %1261 = vmatmul.msk.f32.gmra.mxu3 %vm158_vm1, %v1631_v18 }
 0x43d   :  { %v408_v24 = vpop.f32.mrf.mxu3 }
 0x43e   :  { %v409_v25 = vadd.f32 %v408_v24, %v384_v23 }
 0x440   :  { %1320 = vtanh.f32 %v409_v25 }
 0x445   :  { %v411_v26 = vpop.f32.mrf.mxu3 }
 0x446   :  { %v1321_v27 = vpop.eup %1320  ;;  %v412_v28 = vadd.f32 %v411_v26, %v384_v23 }
 0x447   :  { %1262 = vmatmul.msk.f32.vlgmr.msrb.gmra.mxu2 %vm158_vm1, %v1321_v27 }
 0x448   :  { %1322 = vtanh.f32 %v412_v28 }
 0x44e   :  { %v1323_v29 = vpop.eup %1322 }
 0x44f   :  { %1263 = vmatmul.msk.f32.gmra.mxu2 %vm158_vm1, %v1323_v29 }
 0x4ca   :  { %v444_v30 = vpop.f32.mrf.mxu2 }
 0x4cb   :  { %v1643_v35 = vadd.f32 %v444_v30, %v420_v31  ;;  %v1524_v30 = vmov 0  }
 0x4cc   :  { %1312 = vset.pattern.permute.xlu2 %v1524_v30  ;;  %1310 = vset.pattern.permute.xlu1 %v1524_v30 }
 0x4cd   :  { %v451_v36 = vsel %vm450_vm9, %v1643_v35, -inf  ;;  %1311 = vset.pattern.permute.xlu0 %v1524_v30 }
 0x4d2   :  { %v447_v32 = vpop.f32.mrf.mxu2 }
 0x4d3   :  { %v1639_v33 = vadd.f32 %v447_v32, %v420_v31  ;;  %v559_v31 = vsel %vm158_vm1, %v1627_v16, 0.0 }
 0x4d5   :  { %v454_v34 = vsel %vm450_vm9, %v1639_v33, -inf }
 0x4d6   :  { %455 = vmax.xlane.f32.xlu0 %v454_v34 }
 0x4de   :  { %452 = vmax.xlane.f32.xlu0 %v451_v36 }
 0x549   :  { %v456_v38 = vpop.xlane.xlu0 %455 }
 0x54a   :  { %v458_v39 = vsub.f32 %v1639_v33, %v456_v38 }
 0x54c   :  { %v461_v40 = vmul.f32 1.442695, %v458_v39 }
 0x54e   :  { %1324 = vpow2.f32 %v461_v40 }
 0x551   :  { %v453_v41 = vpop.xlane.xlu0 %452 }
 0x552   :  { %v457_v42 = vsub.f32 %v1643_v35, %v453_v41 }
 0x554   :  { %v1325_v43 = vpop.eup %1324  ;;  %v459_v44 = vmul.f32 1.442695, %v457_v42 }
 0x555   :  { %v466_v45 = vsel %vm450_vm9, %v1325_v43, 0.0 }
 0x556   :  { %1326 = vpow2.f32 %v459_v44  ;;  %467 = vadd.xlane.f32.xlu1 %v466_v45 }
 0x55c   :  { %v1327_v46 = vpop.eup %1326 }
 0x55d   :  { %v463_v47 = vsel %vm450_vm9, %v1327_v46, 0.0 }
 0x55e   :  { %464 = vadd.xlane.f32.xlu1 %v463_v47 }
 0x5c9   :  { %v468_v48 = vpop.xlane.xlu1 %467 }
 0x5ca   :  { %1328 = vrcp.f32 %v468_v48  ;;  %v495_v53 = vand.u32 2147483648, %v468_v48  ;;  %v493_v55 = vand.u32 2147483647, %v468_v48  ;;  %vm489_vm11 = vweird.f32 %v468_v48 }
 0x5cc   :  { %v496_v58 = vor.u32 1.1754944e-38, %v495_v53  ;;  %vm494_vm13 = vcmp.eq.f32.partialorder %v493_v55, 8.507059e+37 }
 0x5d0   :  { %v1329_v49 = vpop.eup %1328 }
 0x5d1   :  { %v485_v50 = vmul.f32 %v1329_v49, %v468_v48  ;;  %v465_v51 = vpop.xlane.xlu1 %464  ;;  %vm490_vm10 = vweird.f32 %v1329_v49 }
 0x5d2   :  { %1330 = vrcp.f32 %v465_v51  ;;  %vm491_vm12 = vmor %vm489_vm11, %vm490_vm10  ;;  %v480_v6 = vand.u32 2147483648, %v465_v51  ;;  %v478_v8 = vand.u32 2147483647, %v465_v51  ;;  %vm474_vm15 = vweird.f32 %v465_v51 }
 0x5d3   :  { %v486_v52 = vsub.f32 1.0, %v485_v50 }
 0x5d4   :  { %v481_v12 = vor.u32 1.1754944e-38, %v480_v6  ;;  %vm479_vm3 = vcmp.eq.f32.partialorder %v478_v8, 8.507059e+37 }
 0x5d5   :  { %v487_v54 = vmul.f32 %v1329_v49, %v486_v52 }
 0x5d7   :  { %v488_v56 = vadd.f32 %v1329_v49, %v487_v54 }
 0x5d8   :  { %v1331_v57 = vpop.eup %1330 }
 0x5d9   :  { %v470_v60 = vmul.f32 %v1331_v57, %v465_v51  ;;  %v492_v61 = vsel %vm491_vm12, %v1329_v49, %v488_v56  ;;  %vm475_vm14 = vweird.f32 %v1331_v57 }
 0x5da   :  { %v497_v63 = vsel %vm494_vm13, %v496_v58, %v492_v61  ;;  %vm476_vm2 = vmor %vm474_vm15, %vm475_vm14 }
 0x5db   :  { %v471_v2 = vsub.f32 1.0, %v470_v60  ;;  %v1653_v5 = vmul.f32 %v1325_v43, %v497_v63 }
 0x5dd   :  { %v472_v7 = vmul.f32 %v1331_v57, %v471_v2  ;;  %v508_v9 = vadd.f32 %v504_v59, %v1653_v5  ;;  %764 = vmatpush.msra.mxu1 %v1653_v5 }
 0x5df   :  { %v512_v10 = vsel %vm450_vm9, %v508_v9, -inf  ;;  %v473_v11 = vadd.f32 %v1331_v57, %v472_v7 }
 0x5e0   :  { %513 = vmax.xlane.f32.xlu0 %v512_v10 }
 0x5e1   :  { %v477_v13 = vsel %vm476_vm2, %v1331_v57, %v473_v11 }
 0x5e2   :  { %v482_v15 = vsel %vm479_vm3, %v481_v12, %v477_v13 }
 0x5e3   :  { %v1658_v17 = vmul.f32 %v1327_v46, %v482_v15 }
 0x5e5   :  { %v507_v19 = vadd.f32 %v502_v14, %v1658_v17  ;;  %765 = vmatpush.msra.mxu1 %v1658_v17 }
 0x5e6   :  { %1265 = vmatmul.msk.f32.vlgmr.msra.gmra.mxu1 %vm95_vm0, %v1584_v3 }
 0x5e7   :  { %v509_v20 = vsel %vm450_vm9, %v507_v19, -inf }
 0x5e8   :  { %510 = vmax.xlane.f32.xlu1 %v509_v20 }
 0x5ee   :  { %1266 = vmatmul.msk.f32.gmra.mxu1 %vm95_vm0, %v1589_v4  ;;  %v560_v4 = vsel %vm158_vm1, %v1631_v18, 0.0 }
 0x5ef   :  { %v561_v32 = vadd.f32 %v560_v4, %v559_v31 }
 0x5f1   :  { %v562_v34 = vrot.slane %v561_v32, 4 }
 0x5f3   :  { %v563_v36 = vadd.f32 %v562_v34, %v561_v32 }
 0x5f5   :  { %v564_v39 = vrot.slane %v563_v36, 2 }
 0x5f7   :  { %v565_v41 = vadd.f32 %v564_v39, %v563_v36 }
 0x5f9   :  { %v566_v46 = vrot.slane %v565_v41, 1 }
 0x5fb   :  { %v567_v52 = vadd.f32 %v566_v46, %v565_v41 }
 0x5fd   :  { %v1674_v59 = vmul.f32 %v567_v52, %v1601_v37 }
 0x5ff   :  { %v1678_v8 = vsub.f32 %v1627_v16, %v1674_v59 }
 0x601   :  { %v571_v13 = vmul.f32 %v1678_v8, %v1678_v8 }
 0x603   :  { %v573_v15 = vsel %vm158_vm1, %v571_v13, 0.0 }
 0x653   :  { %v514_v21 = vpop.xlane.xlu0 %513 }
 0x654   :  { %v516_v22 = vsub.f32 %v508_v9, %v514_v21  ;;  %v1682_v9 = vsub.f32 %v1631_v18, %v1674_v59  ;;  %v1525_v21 = vmov 15.0  }
 0x656   :  { %v519_v23 = vmul.f32 1.442695, %v516_v22  ;;  %v572_v14 = vmul.f32 %v1682_v9, %v1682_v9 }
 0x658   :  { %1332 = vpow2.f32 %v519_v23 }
 0x65b   :  { %v511_v24 = vpop.xlane.xlu1 %510 }
 0x65c   :  { %v515_v25 = vsub.f32 %v507_v19, %v511_v24  ;;  %v574_v19 = vsel %vm158_vm1, %v572_v14, 0.0 }
 0x65d   :  { %v575_v20 = vadd.f32 %v574_v19, %v573_v15 }
 0x65e   :  { %v1333_v26 = vpop.eup %1332  ;;  %v517_v27 = vmul.f32 1.442695, %v515_v25 }
 0x65f   :  { %v524_v28 = vsel %vm450_vm9, %v1333_v26, 0.0  ;;  %v576_v22 = vrot.slane %v575_v20, 4 }
 0x660   :  { %1334 = vpow2.f32 %v517_v27  ;;  %525 = vadd.xlane.f32.xlu2 %v524_v28 }
 0x661   :  { %v577_v24 = vadd.f32 %v576_v22, %v575_v20 }
 0x666   :  { %v1335_v29 = vpop.eup %1334 }
 0x667   :  { %v521_v3 = vsel %vm450_vm9, %v1335_v29, 0.0 }
 0x668   :  { %522 = vadd.xlane.f32.xlu0 %v521_v3 }
 0x6d3   :  { %v526_v38 = vpop.xlane.xlu2 %525 }
 0x6d4   :  { %1336 = vrcp.f32 %v526_v38  ;;  %v553_v45 = vand.u32 2147483648, %v526_v38  ;;  %v551_v48 = vand.u32 2147483647, %v526_v38  ;;  %vm547_vm5 = vweird.f32 %v526_v38 }
 0x6d6   :  { %v554_v51 = vor.u32 1.1754944e-38, %v553_v45  ;;  %vm552_vm7 = vcmp.eq.f32.partialorder %v551_v48, 8.507059e+37 }
 0x6da   :  { %v1337_v40 = vpop.eup %1336 }
 0x6db   :  { %v543_v42 = vmul.f32 %v1337_v40, %v526_v38  ;;  %v523_v43 = vpop.xlane.xlu0 %522  ;;  %vm548_vm4 = vweird.f32 %v1337_v40 }
 0x6dc   :  { %1338 = vrcp.f32 %v523_v43  ;;  %vm549_vm6 = vmor %vm547_vm5, %vm548_vm4  ;;  %v538_v58 = vand.u32 2147483648, %v523_v43  ;;  %v536_v61 = vand.u32 2147483647, %v523_v43  ;;  %vm532_vm10 = vweird.f32 %v523_v43 }
 0x6dd   :  { %v544_v44 = vsub.f32 1.0, %v543_v42  ;;  %1340 = vrcp.f32 %v1525_v21 }
 0x6de   :  { %v539_v6 = vor.u32 1.1754944e-38, %v538_v58  ;;  %vm537_vm12 = vcmp.eq.f32.partialorder %v536_v61, 8.507059e+37 }
 0x6df   :  { %v545_v47 = vmul.f32 %v1337_v40, %v544_v44 }
 0x6e1   :  { %v546_v49 = vadd.f32 %v1337_v40, %v545_v47 }
 0x6e2   :  { %v1339_v50 = vpop.eup %1338 }
 0x6e3   :  { %v528_v53 = vmul.f32 %v1339_v50, %v523_v43  ;;  %v550_v54 = vsel %vm549_vm6, %v1337_v40, %v546_v49  ;;  %vm533_vm8 = vweird.f32 %v1339_v50  ;;  %v1341_v23 = vpop.eup %1340 }
 0x6e4   :  { %v555_v55 = vsel %vm552_vm7, %v554_v51, %v550_v54  ;;  %vm534_vm11 = vmor %vm532_vm10, %vm533_vm8  ;;  %v583_v25 = vmul.f32 15.0, %v1341_v23  ;;  %vm587_vm13 = vweird.f32 %v1341_v23 }
 0x6e5   :  { %v529_v56 = vsub.f32 1.0, %v528_v53  ;;  %v556_v57 = vmul.f32 %v1333_v26, %v555_v55  ;;  %v578_v26 = vrot.slane %v577_v24, 2 }
 0x6e6   :  { %v584_v27 = vsub.f32 1.0, %v583_v25 }
 0x6e7   :  { %v530_v60 = vmul.f32 %v1339_v50, %v529_v56  ;;  %609 = vperm.xlu2 %1312, %v556_v57   ;;  %v558_v63 = vsub.f32 1.0, %v556_v57  ;;  %v579_v28 = vadd.f32 %v578_v26, %v577_v24 }
 0x6e9   :  { %v531_v2 = vadd.f32 %v1339_v50, %v530_v60  ;;  %621 = vperm.xlu1 %1310, %v558_v63   ;;  %v580_v3 = vrot.slane %v579_v28, 1 }
 0x6eb   :  { %v535_v7 = vsel %vm534_vm11, %v1339_v50, %v531_v2  ;;  %v581_v4 = vadd.f32 %v580_v3, %v579_v28  ;;  %vm1016_vm11 = vcmask 1041408  }
 0x6ec   :  { %v540_v10 = vsel %vm537_vm12, %v539_v6, %v535_v7  ;;  %vm900_vm12 = vcmask 254976  }
 0x6ed   :  { %v1684_v11 = vmul.f32 %v1335_v29, %v540_v10  ;;  %v585_v29 = vmul.f32 %v1341_v23, %v584_v27 }
 0x6ef   :  { %v557_v12 = vsub.f32 1.0, %v1684_v11  ;;  %v586_v30 = vadd.f32 %v1341_v23, %v585_v29 }
 0x6f1   :  { %616 = vperm.xlu0 %1311, %v557_v12   ;;  %v588_v31 = vsel %vm587_vm13, %v1341_v23, %v586_v30  ;;  %vm957_vm13 = vcmask 1045504  }
 0x6f2   :  { %v589_v32 = vmul.f32 %v588_v31, %v581_v4 }
 0x6f4   :  { %1342 = vrsqrt.f32 %v589_v32  ;;  %vm597_vm14 = vcmp.eq.f32.partialorder %v589_v32, inf  ;;  %v600_v44 = vand.u32 2147483648, %v589_v32  ;;  %vm599_vm15 = vcmp.eq.f32.partialorder %v589_v32, 0.0 }
 0x6fa   :  { %v1343_v34 = vpop.eup %1342 }
 0x6fb   :  { %v591_v36 = vmul.f32 %v1343_v34, %v589_v32 }
 0x6fd   :  { %v592_v38 = vmul.f32 %v1343_v34, %v591_v36 }
 0x6ff   :  { %v593_v39 = vmul.f32 0.5, %v592_v38 }
 0x701   :  { %v594_v40 = vsub.f32 1.5, %v593_v39 }
 0x703   :  { %v595_v41 = vmul.f32 %v1343_v34, %v594_v40 }
 0x705   :  { %v596_v42 = vmul.f32 %v595_v41, %v589_v32 }
 0x707   :  { %v598_v43 = vsel %vm597_vm14, %v589_v32, %v596_v42 }
 0x708   :  { %v601_v45 = vsel %vm599_vm15, %v600_v44, %v598_v43 }
 0x709   :  { %v674_v46 = vadd.f32 1e-07, %v601_v45 }
 0x70b   :  { %v679_v47 = vmul.f32 %v674_v46, %v674_v46  ;;  %v709_v23 = vand.u32 2147483648, %v674_v46  ;;  %vm703_vm7 = vweird.f32 %v674_v46 }
 0x70d   :  { %1344 = vrcp.f32 %v679_v47  ;;  %v691_v54 = vand.u32 2147483648, %v679_v47  ;;  %vm685_vm3 = vweird.f32 %v679_v47  ;;  %v689_v56 = vand.u32 2147483647, %v679_v47 }
 0x70e   :  { %1346 = vrcp.f32 %v674_v46 }
 0x70f   :  { %v692_v60 = vor.u32 1.1754944e-38, %v691_v54  ;;  %vm690_vm5 = vcmp.eq.f32.partialorder %v689_v56, 8.507059e+37  ;;  %v930_v54 = vld [vmem:[#allocation8 + $0xb8] sm:$0xff]  ;;  %v1008_v56 = vld [vmem:[#allocation8 + $0x100] sm:$0xff] }
 0x713   :  { %v1345_v48 = vpop.eup %1344 }
 0x714   :  { %v681_v49 = vmul.f32 %v1345_v48, %v679_v47  ;;  %vm686_vm2 = vweird.f32 %v1345_v48  ;;  %v1347_v10 = vpop.eup %1346 }
 0x715   :  { %vm687_vm4 = vmor %vm685_vm3, %vm686_vm2  ;;  %v699_v12 = vmul.f32 %v1347_v10, %v674_v46  ;;  %vm704_vm6 = vweird.f32 %v1347_v10  ;;  %vm953_vm3 = vcmask 48128  }
 0x716   :  { %v682_v50 = vsub.f32 1.0, %v681_v49  ;;  %vm705_vm8 = vmor %vm703_vm7, %vm704_vm6 }
 0x717   :  { %v700_v13 = vsub.f32 1.0, %v699_v12 }
 0x718   :  { %v683_v51 = vmul.f32 %v1345_v48, %v682_v50 }
 0x719   :  { %v701_v19 = vmul.f32 %v1347_v10, %v700_v13 }
 0x71a   :  { %v684_v52 = vadd.f32 %v1345_v48, %v683_v51  ;;  %v650_v51 = vld [vmem:[#allocation7] sm:$0x3] }
 0x71b   :  { %v702_v20 = vadd.f32 %v1347_v10, %v701_v19 }
 0x71c   :  { %v688_v58 = vsel %vm687_vm4, %v1345_v48, %v684_v52  ;;  %v932_v52 = vld [vmem:[#allocation8 + $0xc8] sm:$0xff]  ;;  %vm829_vm4 = vcmask 9216  }
 0x71d   :  { %v1696_v63 = vsel %vm690_vm5, %v692_v60, %v688_v58  ;;  %v706_v26 = vsel %vm705_vm8, %v1347_v10, %v702_v20  ;;  %v1006_v58 = vld [vmem:[#allocation8 + $0xf0] sm:$0xff]  ;;  %v1005_v60 = vld [vmem:[#allocation8 + $0xe8] sm:$0xff]  ;;  %v767_v10 = vpop.f32.mrf.mxu1 }
 0x725   :  { %v770_v12 = vpop.f32.mrf.mxu1 }
 0x726   :  { %822 = vmatpush.msra.mxu3 %v770_v12 }
 0x728   :  { %823 = vmatpush.msra.mxu3 %v767_v10 }
 0x741   :  { %v1704_v21 = vpop.permute.xlu2 %609 }
 0x742   :  { %v697_v25 = vmul.f32 %v1704_v21, %v1682_v9  ;;  %v613_v44 = vmul.f32 %v1704_v21, %v1631_v18 }
 0x75b   :  { %v1693_v53 = vpop.permute.xlu1 %621 }
 0x75c   :  { %v629_v55 = vmul.f32 %v1693_v53, %v601_v45  ;;  %v625_v43 = vmul.f32 %v1693_v53, %v1674_v59  ;;  %v931_v53 = vld [vmem:[#allocation8 + $0xc0] sm:$0xff] }
 0x75e   :  { %v676_v57 = vmul.f32 %v629_v55, %v629_v55  ;;  %634 = vrot.lane.b32.xlu1 %v629_v55, %s1526_s3  ;;  %v929_v55 = vld [vmem:[#allocation8 + $0xb0] sm:$0xff] }
 0x760   :  { %v678_v61 = vmul.f32 0.5, %v676_v57  ;;  %v1007_v57 = vld [vmem:[#allocation8 + $0xf8] sm:$0xff] }
 0x762   :  { %v695_v2 = vmul.f32 %v1696_v63, %v678_v61 }
 0x763   :  { %v617_v6 = vpop.permute.xlu0 %616 }
 0x764   :  { %v1699_v7 = vmul.f32 %v617_v6, %v601_v45  ;;  %v627_v45 = vadd.f32 %v625_v43, %v613_v44 }
 0x766   :  { %632 = vrot.lane.b32.xlu1 %v1699_v7, %s1526_s3 }
 0x76e   :  { %604 = vperm.xlu1 %1310, %v1684_v11   ;;  %v707_v11 = vand.u32 2147483647, %v674_v46 }
 0x770   :  { %vm708_vm10 = vcmp.eq.f32.partialorder %v707_v11, 8.507059e+37  ;;  %v1118_v11 = vld [vmem:[#allocation8 + $0x120] sm:$0x3f] }
 0x7d0   :  { %v635_v14 = vpop.permute.xlu1 %634 }
 0x7d1   :  { %v639_v15 = vmul.f32 %v635_v14, %v1579_v0  ;;  %v710_v0 = vor.u32 1.1754944e-38, %v709_v23 }
 0x7d3   :  { %644 = vrot.lane.b32.xlu0 %v639_v15, %s1527_s15  ;;  %v711_v27 = vsel %vm708_vm10, %v710_v0, %v706_v26  ;;  %v928_v15 = vld [vmem:[#allocation8 + $0xd8] sm:$0x3f] }
 0x7d4   :  { %v713_v28 = vmul.f32 %v711_v27, %v697_v25  ;;  %1272 = vmatpush.msk.msrb.mxu3 %vm957_vm13, %v928_v15  ;;  %v1313_v25 = vld [vmem:[#allocation8 + $0x110] ss:$0 sm:$0xff] }
 0x7d6   :  { %v715_v4 = vmul.f32 %v713_v28, %v713_v28 }
 0x7d8   :  { %v633_v22 = vpop.permute.xlu1 %632  ;;  %v717_v32 = vsel %vm158_vm1, %v715_v4, 0.0 }
 0x7d9   :  { %v638_v24 = vmul.f32 %v633_v22, %v1581_v1 }
 0x7db   :  { %642 = vrot.lane.b32.xlu1 %v638_v24, %s1527_s15 }
 0x7e0   :  { %v1709_v29 = vpop.permute.xlu1 %604 }
 0x7e1   :  { %v696_v3 = vmul.f32 %v1709_v29, %v1678_v8  ;;  %v872_v8 = vld [vmem:[#allocation8 + $0xd0] sm:$0x3f]  ;;  %v612_v48 = vmul.f32 %v1709_v29, %v1627_v16  ;;  %v1068_v28 = vmul.f32 %v1313_v25, %v1709_v29 }
 0x7e2   :  { %1269 = vmatpush.xpose.msk.msra.mxu2 %vm158_vm1, %v872_v8 }
 0x7e3   :  { %v712_v30 = vmul.f32 %v711_v27, %v696_v3 }
 0x7e5   :  { %v714_v1 = vmul.f32 %v712_v30, %v712_v30 }
 0x7e7   :  { %v716_v31 = vsel %vm158_vm1, %v714_v1, 0.0  ;;  %v1069_v1 = vmul.f32 %v1313_v25, %v1704_v21 }
 0x7e8   :  { %v718_v34 = vadd.f32 %v717_v32, %v716_v31 }
 0x7ea   :  { %v719_v9 = vrot.slane %v718_v34, 4 }
 0x7ec   :  { %v720_v36 = vadd.f32 %v719_v9, %v718_v34 }
 0x7ee   :  { %v721_v38 = vrot.slane %v720_v36, 2 }
 0x7f0   :  { %v722_v39 = vadd.f32 %v721_v38, %v720_v36 }
 0x7f2   :  { %v723_v40 = vrot.slane %v722_v39, 1 }
 0x7f4   :  { %v1715_v41 = vadd.f32 %v723_v40, %v722_v39 }
 0x7f6   :  { %v1718_v42 = vadd.f32 %v1715_v41, %v695_v2 }
 0x810   :  { %773 = vxpose.xlu1.b32.start [1/2] (short) (narrow) %v1658_v17, 8  ;;  %v624_v17 = vmul.f32 %v617_v6, %v1674_v59  ;;  %v1009_v59 = vld [vmem:[#allocation8 + $0x108] sm:$0x3] }
 0x811   :  { %1274 = vmatpush.msk.msrb.mxu2 %vm1016_vm11, %v1009_v59 }
 0x812   :  { %v626_v49 = vadd.f32 %v624_v17, %v612_v48 }
 0x818   :  { %774 = vxpose.xlu1.b32.end [2/2] (short) (narrow) %v1653_v5, 8 }
 0x845   :  { %v645_v46 = vpop.permute.xlu0 %644 }
 0x846   :  { %v649_v47 = vadd.f32 %v645_v46, %v627_v45 }
 0x848   :  { %668 = vmatpush.msra.mxu0 %v649_v47 }
 0x84d   :  { %v643_v5 = vpop.permute.xlu1 %642 }
 0x84e   :  { %v648_v50 = vadd.f32 %v643_v5, %v626_v49 }
 0x850   :  { %669 = vmatpush.msra.mxu0 %v648_v50 }
 0x851   :  { %1264 = vmatmul.msk.f32.vlgmr.msra.gmra.mxu0 %vm95_vm0, %v650_v51 }
 0x852   :  { %945 = vmatpush.msrb.mxu0 %v932_v52 }
 0x854   :  { %946 = vmatpush.msrb.mxu0 %v931_v53  ;;  %v838_v53 = vlaneseq }
 0x856   :  { %947 = vmatpush.msrb.mxu0 %v930_v54 }
 0x858   :  { %948 = vmatpush.msrb.mxu0 %v929_v55  ;;  %v839_v55 = vshrl.u32 %v838_v53, 7 }
 0x85a   :  { %1055 = vmatpush.msra.mxu0 %v1008_v56 }
 0x85c   :  { %1056 = vmatpush.msra.mxu0 %v1007_v57 }
 0x85e   :  { %1057 = vmatpush.msra.mxu0 %v1006_v58 }
 0x860   :  { %1058 = vmatpush.msra.mxu0 %v1005_v60 }
 0x8b4   :  { %v789_v13 = vpop.trf.xlu1 }
 0x8b5   :  { %1267 = vmatmul.msk.f32.vlgmr.msra.gmra.mxu3 %vm95_vm0, %v789_v13 }
 0x8b6   :  { %1110 = vmatpush.msra.mxu3 %v1008_v56  ;;  %v841_v56 = vand.u32 127, %v838_v53 }
 0x8b8   :  { %1111 = vmatpush.msra.mxu3 %v1007_v57  ;;  %v1146_v57 = vld [vmem:[#allocation8 + $0x128] sm:$0x3]  ;;  %vm842_vm5 = vcmp.eq.s32.totalorder %v839_v55, %v841_v56 }
 0x8ba   :  { %1112 = vmatpush.msra.mxu3 %v1006_v58 }
 0x8bc   :  { %1113 = vmatpush.msra.mxu3 %v1005_v60 }
 0x8ce   :  { %v1732_v61 = vpop.f32.mrf.mxu0 }
 0x8cf   :  { %1270 = vmatmul.msk.f32.vlgmr.msra.gmra.mxu2 %vm158_vm1, %v1732_v61  ;;  %1271 = vmatmul.msk.f32.vlgmr.msrb.gmra.mxu0 %vm158_vm1, %v1732_v61  ;;  %v899_v2 = vmul.f32 %v1732_v61, %v1732_v61 }
 0x8d1   :  { %v901_v6 = vsel %vm900_vm12, %v899_v2, 0.0 }
 0x8d2   :  { %902 = vadd.xlane.f32.xlu0 %v901_v6 }
 0x8d7   :  { %1275 = vmatmul.msk.f32.vlgmr.msrb.gmra.mxu2 %vm450_vm9, %v1643_v35  ;;  %1277 = vmatmul.msk.f32.vlgmr.msra.gmra.mxu0 %vm158_vm1, %v1627_v16  ;;  %v1074_v35 = vld [vmem:[#allocation8 + $0x118] sm:$0x3f] }
 0x8d8   :  { %1279 = vmatpush.msk.msrb.mxu1 %vm957_vm13, %v1074_v35 }
 0x8da   :  { %1282 = vmatpush.msk.msra.mxu1 %vm957_vm13, %v1118_v11 }
 0x8df   :  { %1276 = vmatmul.msk.f32.gmra.mxu2 %vm450_vm9, %v1639_v33  ;;  %1278 = vmatmul.msk.f32.gmra.mxu0 %vm158_vm1, %v1631_v18  ;;  %v906_v18 = vperm.slane %v1607_v62, 6 }
 0x938   :  { %v825_v47 = vpop.f32.mrf.mxu3 }
 0x939   :  { %v828_v48 = vand.u32 2147483647, %v825_v47  ;;  %v843_v58 = vsel %vm842_vm5, %v825_v47, 0.0  ;;  %v1529_v47 = vmov 32.0  }
 0x93a   :  { %v844_v60 = vsel %vm829_vm4, %v843_v58, 0.0 }
 0x93b   :  { %v830_v17 = vsel %vm829_vm4, %v828_v48, 0.0  ;;  %v845_v2 = vrot.slane %v844_v60, 4 }
 0x93c   :  { %v831_v49 = vrot.slane %v830_v17, 4 }
 0x93d   :  { %v846_v10 = vadd.f32 %v845_v2, %v844_v60 }
 0x93e   :  { %v832_v5 = vadd.f32 %v831_v49, %v830_v17 }
 0x93f   :  { %v847_v13 = vrot.slane %v846_v10, 2 }
 0x940   :  { %v833_v50 = vrot.slane %v832_v5, 2 }
 0x941   :  { %v848_v35 = vadd.f32 %v847_v13, %v846_v10 }
 0x942   :  { %v834_v51 = vadd.f32 %v833_v50, %v832_v5 }
 0x944   :  { %v835_v52 = vrot.slane %v834_v51, 1 }
 0x945   :  { %v903_v19 = vpop.xlane.xlu0 %902 }
 0x946   :  { %v836_v54 = vadd.f32 %v835_v52, %v834_v51 }
 0x948   :  { %v837_v59 = vmax.f32 %v836_v54, 1e-12 }
 0x94a   :  { %vm856_vm6 = vweird.f32 %v837_v59 }
 0x94c   :  { %v1749_v14 = vpop.f32.mrf.mxu0 }
 0x952   :  { %v896_v16 = vpop.f32.mrf.mxu2 }
 0x953   :  { %v904_v33 = vmul.f32 -2.0, %v896_v16  ;;  %v862_v16 = vand.u32 2147483648, %v837_v59 }
 0x954   :  { %v1060_v23 = vpop.f32.mrf.mxu0 }
 0x955   :  { %v905_v20 = vadd.f32 %v904_v33, %v903_v19  ;;  %v675_v33 = vmul.f32 %v1699_v7, %v1699_v7  ;;  %v860_v19 = vand.u32 2147483647, %v837_v59 }
 0x957   :  { %v907_v22 = vadd.f32 %v906_v18, %v905_v20  ;;  %v849_v20 = vrot.slane %v848_v35, 1  ;;  %vm861_vm10 = vcmp.eq.f32.partialorder %v860_v19, 8.507059e+37  ;;  %v1206_v19 = vld [vmem:[#allocation8 + $0x140] sm:$0x1] }
 0x959   :  { %v908_v24 = vmax.f32 %v907_v22, 0.0 }
 0x95a   :  { %v1037_v26 = vpop.f32.mrf.mxu2 }
 0x95b   :  { %v910_v0 = vadd.f32 0.0001, %v908_v24  ;;  %v1061_v27 = vadd.f32 %v1060_v23, %v1037_v26  ;;  %v909_v8 = vadd.f32 1.0, %v908_v24  ;;  %v863_v23 = vor.u32 1.1754944e-38, %v862_v16 }
 0x95c   :  { %v1063_v62 = vpop.f32.mrf.mxu0 }
 0x95d   :  { %1348 = vrcp.f32 %v910_v0  ;;  %v1070_v3 = vadd.f32 %v1068_v28, %v1061_v27  ;;  %v922_v36 = vand.u32 2147483648, %v910_v0  ;;  %v920_v39 = vand.u32 2147483647, %v910_v0 }
 0x95e   :  { %vm916_vm14 = vweird.f32 %v910_v0 }
 0x95f   :  { %1072 = vst [vmem:[#allocation10] sm:$0xff] %v1070_v3  ;;  %v923_v29 = vor.u32 1.1754944e-38, %v922_v36  ;;  %vm921_vm2 = vcmp.eq.f32.partialorder %v920_v39, 8.507059e+37 }
 0x962   :  { %v1040_v30 = vpop.f32.mrf.mxu2 }
 0x963   :  { %v1349_v4 = vpop.eup %1348  ;;  %v1064_v31 = vadd.f32 %v1063_v62, %v1040_v30 }
 0x964   :  { %v912_v32 = vmul.f32 %v1349_v4, %v910_v0  ;;  %vm917_vm0 = vweird.f32 %v1349_v4  ;;  %v850_v0 = vadd.f32 %v849_v20, %v848_v35  ;;  %v1202_v35 = vld [vmem:[#allocation8 + $0x138] sm:$0x1] }
 0x965   :  { %v1071_v34 = vadd.f32 %v1069_v1, %v1064_v31  ;;  %vm918_vm15 = vmor %vm916_vm14, %vm917_vm0 }
 0x966   :  { %v913_v9 = vsub.f32 1.0, %v912_v32 }
 0x967   :  { %1073 = vst [vmem:[#allocation10 + $0x8] sm:$0xff] %v1071_v34 }
 0x968   :  { %v914_v38 = vmul.f32 %v1349_v4, %v913_v9  ;;  %1223 = dma.vmem_to_hbm [thread:$0]  %s1216_s17, 256, %s1218_s20, [#allocation4], %s1518_s30, %s1518_s30, %s1519_s6  }
 0x96a   :  { %v915_v40 = vadd.f32 %v1349_v4, %v914_v38 }
 0x96c   :  { %v919_v43 = vsel %vm918_vm15, %v1349_v4, %v915_v40 }
 0x96d   :  { %v924_v44 = vsel %vm921_vm2, %v923_v29, %v919_v43 }
 0x96e   :  { %v925_v45 = vmul.f32 %v924_v44, %v909_v8 }
 0x970   :  { %1350 = vlog2.f32 %v925_v45 }
 0x971   :  { %1352 = vrcp.f32 %v837_v59 }
 0x976   :  { %v1351_v21 = vpop.eup %1350 }
 0x977   :  { %v927_v46 = vmul.f32 0.6931472, %v1351_v21 }
 0x979   :  { %1273 = vmatmul.msk.f32.vlgmr.msrb.gmra.mxu3 %vm953_vm3, %v927_v46  ;;  %1280 = vmatmul.msk.f32.vlgmr.msrb.gmra.mxu1 %vm953_vm3, %v927_v46 }
 0x97a   :  { %1284 = vmatpush.msk.msrb.mxu3 %vm1016_vm11, %v1146_v57 }
 0x981   :  { %1281 = vmatmul.msk.f32.vlgmr.msra.gmra.mxu3 %vm158_vm1, %v1732_v61  ;;  %1283 = vmatmul.msk.f32.vlgmr.msra.gmra.mxu1 %vm953_vm3, %v908_v24  ;;  %v1353_v61 = vpop.eup %1352  ;;  %v677_v24 = vmul.f32 0.5, %v675_v33 }
 0x982   :  { %v852_v6 = vmul.f32 %v1353_v61, %v837_v59  ;;  %vm857_vm7 = vweird.f32 %v1353_v61 }
 0x983   :  { %vm858_vm8 = vmor %vm856_vm6, %vm857_vm7  ;;  %v694_v7 = vmul.f32 %v1696_v63, %v677_v24  ;;  %v730_v63 = vsel %vm158_vm1, %v1718_v42, 0.0 }
 0x984   :  { %v853_v12 = vsub.f32 1.0, %v852_v6 }
 0x985   :  { %v725_v28 = vadd.f32 %v1715_v41, %v694_v7  ;;  %v1174_v41 = vld [vmem:[#allocation8 + $0x130] sm:$0x3] }
 0x986   :  { %v854_v15 = vmul.f32 %v1353_v61, %v853_v12  ;;  %1286 = vmatpush.msk.msra.mxu2 %vm1016_vm11, %v1174_v41 }
 0x987   :  { %v727_v62 = vsel %vm158_vm1, %v725_v28, 0.0 }
 0x988   :  { %v855_v18 = vadd.f32 %v1353_v61, %v854_v15 }
 0x98a   :  { %v859_v25 = vsel %vm858_vm8, %v1353_v61, %v855_v18 }
 0x98b   :  { %v864_v27 = vsel %vm861_vm10, %v863_v23, %v859_v25 }
 0x98c   :  { %v865_v3 = vmul.f32 %v864_v27, %v850_v0 }
 0x98e   :  { %v1268_v30 = vadd.f32 -1.0, %v865_v3 }
 0x990   :  { %v867_v4 = vmul.f32 %v1268_v30, %v1268_v30 }
 0x9f6   :  { %v1095_v2 = vpop.f32.mrf.mxu1 }
 0x9fc   :  { %v978_v22 = vpop.f32.mrf.mxu3 }
 0x9fd   :  { %v979_v11 = vadd.f32 %v978_v22, %v1749_v14  ;;  %v868_v14 = vsel %vm450_vm9, %v867_v4, 0.0 }
 0x9fe   :  { %v1142_v33 = vpop.f32.mrf.mxu1 }
 0x9ff   :  { %1285 = vmatmul.msk.f32.vlgmr.msrb.gmra.mxu3 %vm450_vm9, %v979_v11  ;;  %v981_v26 = vsel %vm829_vm4, %v979_v11, -inf }
 0xa00   :  { %982 = vmax.xlane.f32.xlu2 %v981_v26 }
 0xa04   :  { %v1115_v6 = vpop.f32.mrf.mxu3 }
 0xa05   :  { %v1116_v13 = vadd.f32 %v1115_v6, %v1095_v2 }
 0xa07   :  { %v1145_v20 = vadd.f32 %v1142_v33, %v1116_v13 }
 0xa08   :  { %728 = vadd.xlane.f32.xlu2 %v727_v62 }
 0xa10   :  { %869 = vadd.xlane.f32.xlu2 %v868_v14 }
 0xa73   :  { %v983_v1 = vpop.xlane.xlu2 %982 }
 0xa74   :  { %v984_v31 = vsub.f32 %v979_v11, %v983_v1 }
 0xa76   :  { %v985_v32 = vmul.f32 1.442695, %v984_v31 }
 0xa78   :  { %1354 = vpow2.f32 %v985_v32 }
 0xa7b   :  { %v729_v53 = vpop.xlane.xlu2 %728 }
 0xa7e   :  { %v1355_v34 = vpop.eup %1354 }
 0xa7f   :  { %v987_v9 = vsel %vm829_vm4, %v1355_v34, 0.0 }
 0xa80   :  { %988 = vadd.xlane.f32.xlu0 %v987_v9 }
 0xa82   :  { %v1170_v18 = vpop.f32.mrf.mxu3 }
 0xa83   :  { %v870_v12 = vpop.xlane.xlu2 %869  ;;  %v1173_v23 = vadd.f32 %v1170_v18, %v1145_v20 }
 0xa84   :  { %v871_v16 = vmul.f32 0.5, %v870_v12 }
 0xa86   :  { %v1207_v24 = vmul.f32 %v1206_v19, %v871_v16 }
 0xa88   :  { %731 = vadd.xlane.f32.xlu0 %v730_v63  ;;  %v1208_v0 = vperm.slane %v1207_v24, 0 }
 0xaf3   :  { %v989_v36 = vpop.xlane.xlu0 %988 }
 0xaf4   :  { %1356 = vrcp.f32 %v989_v36  ;;  %v1001_v29 = vand.u32 2147483648, %v989_v36  ;;  %v999_v43 = vand.u32 2147483647, %v989_v36  ;;  %vm995_vm13 = vweird.f32 %v989_v36 }
 0xaf5   :  { %1358 = vrcp.f32 %v1529_v47 }
 0xaf6   :  { %v1002_v45 = vor.u32 1.1754944e-38, %v1001_v29  ;;  %vm1000_vm14 = vcmp.eq.f32.partialorder %v999_v43, 8.507059e+37 }
 0xafa   :  { %v1357_v38 = vpop.eup %1356 }
 0xafb   :  { %v991_v39 = vmul.f32 %v1357_v38, %v989_v36  ;;  %vm996_vm12 = vweird.f32 %v1357_v38  ;;  %v1359_v48 = vpop.eup %1358  ;;  %v732_v51 = vpop.xlane.xlu0 %731 }
 0xafc   :  { %vm997_vm0 = vmor %vm995_vm13, %vm996_vm12  ;;  %v734_v17 = vmul.f32 32.0, %v1359_v48  ;;  %vm738_vm1 = vweird.f32 %v1359_v48 }
 0xafd   :  { %v992_v40 = vsub.f32 1.0, %v991_v39 }
 0xafe   :  { %v735_v49 = vsub.f32 1.0, %v734_v17 }
 0xaff   :  { %v993_v8 = vmul.f32 %v1357_v38, %v992_v40 }
 0xb00   :  { %v736_v5 = vmul.f32 %v1359_v48, %v735_v49 }
 0xb01   :  { %v994_v44 = vadd.f32 %v1357_v38, %v993_v8 }
 0xb02   :  { %v737_v50 = vadd.f32 %v1359_v48, %v736_v5 }
 0xb03   :  { %v998_v21 = vsel %vm997_vm0, %v1357_v38, %v994_v44 }
 0xb04   :  { %v1003_v42 = vsel %vm1000_vm14, %v1002_v45, %v998_v21  ;;  %v739_v52 = vsel %vm738_vm1, %v1359_v48, %v737_v50 }
 0xb05   :  { %v1004_v46 = vmul.f32 %v1355_v34, %v1003_v42  ;;  %v741_v54 = vmul.f32 %v739_v52, %v732_v51  ;;  %v740_v55 = vmul.f32 %v739_v52, %v729_v53 }
 0xb07   :  { %1287 = vmatmul.msk.f32.vlgmr.msra.gmra.mxu2 %vm450_vm9, %v1004_v46  ;;  %v742_v56 = vadd.f32 %v741_v54, %v740_v55 }
 0xb09   :  { %v743_v57 = vrot.slane %v742_v56, 4 }
 0xb0b   :  { %v744_v59 = vadd.f32 %v743_v57, %v742_v56 }
 0xb0d   :  { %v745_v58 = vrot.slane %v744_v59, 2 }
 0xb0f   :  { %v746_v60 = vadd.f32 %v745_v58, %v744_v59 }
 0xb11   :  { %v747_v61 = vrot.slane %v746_v60, 1 }
 0xb13   :  { %v748_v10 = vadd.f32 %v747_v61, %v746_v60 }
 0xb15   :  { %v749_v15 = vmul.f32 %v748_v10, %v1601_v37 }
 0xb17   :  { %v1203_v22 = vmul.f32 %v1202_v35, %v749_v15 }
 0xb19   :  { %v1204_v26 = vperm.slane %v1203_v22, 0 }
 0xb8a   :  { %v1198_v11 = vpop.f32.mrf.mxu2 }
 0xb8b   :  { %v1201_v25 = vadd.f32 %v1198_v11, %v1173_v23 }
 0xb8d   :  { %v1205_v37 = vadd.f32 %v1204_v26, %v1201_v25 }
 0xb8f   :  { %v1209_v27 = vadd.f32 %v1208_v0, %v1205_v37 }
 0xb91   :  { %1210 = vst [vmem:[#allocation11] sm:$0x3] %v1209_v27 }
 0xb92   :  { %1234 = dma.vmem_to_hbm [thread:$0]  %s1230_s21, 32, %s1232_s24, [#allocation12]  }
 0xb93   :  { %1510 = dma.done.wait [#allocation4], 256  }
 0xb94   :  { %1511 = vsyncadd [#allocation4], 4294967040 }
 0xb95   :  { %1512 = dma.done.wait [#allocation12], 32  }
 0xb96   :  { %1513 = vsyncadd [#allocation12], 4294967264 }
 0xb97   :  { %1243 = vsyncpa [#allocation3], 1 }
 0xb98   :  { %1244 = vsyncpa [#allocation6], 1 }
 0xb99   :  { %1245 = vsyncpa [#allocation9], 1 }
 0xb9a   :  { %1246 = vsyncpa [#allocation4], 1 }
 0xb9b   :  { %1247 = vsyncpa [#allocation12], 1 }

</bundles_post_ra>
